<compile_context>
chip_gen: v6e
topology: v6e:2x2x1
jax: 0.10.0
libtpu: 0.0.40
codegen_flags: <defaults>
</compile_context>

<pallas_src>
import math

import jax
import jax.numpy as jnp
from jax import lax
from jax.experimental import pallas as pl
from jax.experimental.pallas import tpu as pltpu


# ----------------------------------------------------------------------------
# Pallas kernel
# ----------------------------------------------------------------------------
def build_kernel(S, K, T, C, FC, APAD):
    """S = scale_num, K = kernel_size_grav (odd), T = time, C = in-chan, FC = feature_channel."""
    assert K % 2 == 1 and K >= 3, "kernel_size_grav must be odd and >= 3"
    G = 3 * S * FC          # lanes per sensor group in the fused conv output

    def kernel(slab_ref, w_ref, shift_ref, attb_ref, eg_ref, ey_ref, sc_ref,
               out_ref, attn_ref):
        a_bias = sc_ref[0, 0]                    # attention linear bias
        prelu_a = sc_ref[0, 1]                   # PReLU slope

        # ---- every conv (+ folded BN scale) in one MXU matmul --------------
        # p lanes ordered (group: grav/gyro/acc, scale i, sensor row r, feat f)
        p = jnp.dot(slab_ref[0], w_ref[...], preferred_element_type=jnp.float32)
        p = jnp.maximum(p + shift_ref[...], 0.0)                 # BN shift + ReLU

        # ---- attention logits: one matmul over the grav+gyro lanes ---------
        logits = jnp.dot(p[:, :2 * G], attb_ref[...],
                         preferred_element_type=jnp.float32) + a_bias  # (T, 2S)
        logits = jnp.where(logits > 0, logits, prelu_a * logits)        # PReLU

        # softmax over the 2S sensor columns
        mx = jnp.max(logits, axis=1, keepdims=True)
        e = jnp.exp(logits - mx)
        attn = e * pl.reciprocal(jnp.sum(e, axis=1, keepdims=True), approx=False)

        # lane-dense (padded) attention store; wrapper slices back to 2S cols
        if APAD > 2 * S:
            attn_ref[0] = jnp.concatenate(
                [attn, jnp.zeros((T, APAD - 2 * S), jnp.float32)], axis=1)
        else:
            attn_ref[0] = attn

        # norm_num = sqrt(S) / || mean_t attn ||_2   (per batch element)
        m = jnp.mean(attn, axis=0, keepdims=True)                # (1, 2S)
        nrm2 = jnp.sum(m * m, axis=1, keepdims=True)             # (1, 1)
        factor = math.sqrt(S) * lax.rsqrt(nrm2)                  # (1, 1)
        attn_s = attn * factor                                   # (T, 2S)

        # broadcast each scale's attention over its (row, feature) lanes
        gb = jnp.dot(attn_s, eg_ref[...], preferred_element_type=jnp.float32)  # (T, G)
        yb = jnp.dot(attn_s, ey_ref[...], preferred_element_type=jnp.float32)  # (T, G)

        # attitude = weighted grav + weighted gyro; dynamic = accel unchanged
        att_part = gb * p[:, :G] + yb * p[:, G:2 * G]            # (T, G)
        out_ref[0] = jnp.concatenate([att_part, p[:, 2 * G:]], axis=1)   # (T, 2G)

    return kernel


# ----------------------------------------------------------------------------
# Wrapper (layout plumbing + pallas_call)
# ----------------------------------------------------------------------------
def imu_fusion_block(x, KP, S, K, FC):
    N, C, nine, T = x.shape
    assert nine == 9
    pad = K // 2
    G = 3 * S * FC
    APAD = ((2 * S + 127) // 128) * 128

    # im2col slab: slab[n, t, row*K*C + k*C + c] = x_padded[n, row, t + k, c]
    x_t = jnp.transpose(x, (0, 2, 3, 1))                          # (N, 9, T, C)
    x_pad = jnp.pad(x_t, ((0, 0), (0, 0), (pad, pad), (0, 0)))    # (N, 9, T+K-1, C)
    windows = jnp.stack([x_pad[:, :, k:k + T, :] for k in range(K)], axis=3)
    slab = jnp.transpose(windows, (0, 2, 1, 3, 4)).reshape(N, T, 9 * K * C)

    kernel = build_kernel(S, K, T, C, FC, APAD)

    out_raw, attn_pad = pl.pallas_call(
        kernel,
        grid=(N,),
        in_specs=[
            pl.BlockSpec((1, T, 9 * K * C), lambda n: (n, 0, 0)),
            pl.BlockSpec((9 * K * C, 3 * G), lambda n: (0, 0)),
            pl.BlockSpec((1, 3 * G), lambda n: (0, 0)),
            pl.BlockSpec((2 * G, 2 * S), lambda n: (0, 0)),
            pl.BlockSpec((2 * S, G), lambda n: (0, 0)),
            pl.BlockSpec((2 * S, G), lambda n: (0, 0)),
            pl.BlockSpec(memory_space=pltpu.MemorySpace.SMEM),
        ],
        out_specs=[
            pl.BlockSpec((1, T, 2 * G), lambda n: (n, 0, 0)),
            pl.BlockSpec((1, T, APAD), lambda n: (n, 0, 0)),
        ],
        out_shape=[
            jax.ShapeDtypeStruct((N, T, 2 * G), jnp.float32),
            jax.ShapeDtypeStruct((N, T, APAD), jnp.float32),
        ],
        compiler_params=pltpu.CompilerParams(
            dimension_semantics=("parallel",)),
    )(slab, KP["W"], KP["shift"], KP["B"], KP["Eg"], KP["Ey"], KP["scalars"])

    # (N, T, 6S*FC) -> (N, FC, 6S, T)  (lane index = (row j, feature f))
    out = jnp.transpose(out_raw.reshape(N, T, 6 * S, FC), (0, 3, 2, 1))
    sensor_attn = attn_pad[:, :, :2 * S, None]                    # (N, T, 2S, 1)
    return out, sensor_attn


# ----------------------------------------------------------------------------
# Deterministic parameter init (PyTorch layouts) + conversion to kernel layout
# ----------------------------------------------------------------------------
def init_params(key, S, K, C, FC):
    Kg = K - 1
    keys = jax.random.split(key, 12)

    def nrm(k, shape, s=0.1):
        return s * jax.random.normal(k, shape, jnp.float32)

    def bn(k):
        k1, k2, k3, k4 = jax.random.split(k, 4)
        gamma = 1.0 + 0.1 * jax.random.normal(k1, (S, FC), jnp.float32)
        beta = 0.1 * jax.random.normal(k2, (S, FC), jnp.float32)
        mean = 0.1 * jax.random.normal(k3, (S, FC), jnp.float32)
        var = 0.5 + jax.random.uniform(k4, (S, FC), dtype=jnp.float32)
        return gamma, beta, mean, var

    P = {
        "wg": nrm(keys[0], (S, FC, C, 1, K)),   "bg": nrm(keys[1], (S, FC)),
        "wy": nrm(keys[2], (S, FC, C, 1, Kg)),  "by": nrm(keys[3], (S, FC)),
        "wa": nrm(keys[4], (S, FC, C, 1, K)),   "ba": nrm(keys[5], (S, FC)),
        "bn_g": bn(keys[6]), "bn_y": bn(keys[7]), "bn_a": bn(keys[8]),
        "attw": nrm(keys[9], (1, 3 * FC)),
        "attb": nrm(keys[10], (1,)),
        "prelu_a": jnp.float32(0.25),            # nn.PReLU default
    }
    return P


def prep_kernel_params(P, S, K, C, FC, eps=1e-5):
    G = 3 * S * FC
    KC = K * C

    def fold(w, b, bnp):
        gamma, beta, mean, var = bnp
        scale = gamma / jnp.sqrt(var + eps)                       # (S, FC)
        shift = beta + (b - mean) * scale                         # (S, FC)
        wk = jnp.transpose(w[:, :, :, 0, :], (0, 3, 2, 1))        # (S, Kw, C, FC)
        return wk * scale[:, None, None, :], shift                # BN scale folded in

    wg_k, hg = fold(P["wg"], P["bg"], P["bn_g"])
    wy_k, hy = fold(P["wy"], P["by"], P["bn_y"])
    wa_k, ha = fold(P["wa"], P["ba"], P["bn_a"])
    # gyro uses K-1 taps with asymmetric (Kg//2-1, Kg//2) padding; under the
    # shared symmetric (K//2, K//2) padding this equals a K-tap conv whose
    # tap 0 is zero.
    wy_k = jnp.concatenate([jnp.zeros((S, 1, C, FC), jnp.float32), wy_k], axis=1)

    # fused block-sparse conv weight (9*K*C, 3*G); output lanes (g, i, r, f)
    W = jnp.zeros((9 * KC, 3 * G), jnp.float32)
    for g, wk in enumerate((wg_k, wy_k, wa_k)):
        blk = jnp.transpose(wk, (1, 2, 0, 3)).reshape(KC, S, FC)  # [k*C+c, i, f]
        for r in range(3):
            row0 = (3 * g + r) * KC
            for i in range(S):
                col0 = g * G + i * 3 * FC + r * FC
                W = W.at[row0:row0 + KC, col0:col0 + FC].set(blk[:, i, :])

    # BN shift (incl. conv bias), broadcast over the 3 sensor rows: (1, 3*G)
    def tile_shift(h):                                            # (S, FC) -> (G,)
        return jnp.broadcast_to(h[:, None, :], (S, 3, FC)).reshape(G)
    shift = jnp.concatenate([tile_shift(hg), tile_shift(hy), tile_shift(ha)])[None, :]

    # attention logit weight: logits[t, 2i+a] = sum_{r,f} act[a,i,r,f]*attw[r,f]
    attw_rf = P["attw"].reshape(3, FC)
    B = jnp.zeros((2 * G, 2 * S), jnp.float32)
    for a in range(2):
        for i in range(S):
            for r in range(3):
                row0 = a * G + i * 3 * FC + r * FC
                B = B.at[row0:row0 + FC, 2 * i + a].set(attw_rf[r])

    # 0/1 selection matrices broadcasting attn columns over (row, feature) lanes
    Eg = jnp.zeros((2 * S, G), jnp.float32)
    Ey = jnp.zeros((2 * S, G), jnp.float32)
    for i in range(S):
        Eg = Eg.at[2 * i, i * 3 * FC:(i + 1) * 3 * FC].set(1.0)
        Ey = Ey.at[2 * i + 1, i * 3 * FC:(i + 1) * 3 * FC].set(1.0)

    scalars = jnp.stack([P["attb"][0], P["prelu_a"]]).reshape(1, 2)
    return {"W": W, "shift": shift, "B": B, "Eg": Eg, "Ey": Ey, "scalars": scalars}


# ----------------------------------------------------------------------------
# Pure-JAX reference (mirrors the PyTorch forward, eval-mode BatchNorm)
# ----------------------------------------------------------------------------
def reference(x, P, S, K, FC, eps=1e-5):
    N, C, _, T = x.shape
    Kg = K - 1
    x_grav, x_gyro, x_acc = x[:, :, 0:3, :], x[:, :, 3:6, :], x[:, :, 6:9, :]

    def conv_bn_relu(inp, w, b, bnp, i, pad):
        gamma, beta, mean, var = bnp
        y = lax.conv_general_dilated(
            inp, w[i], window_strides=(1, 1), padding=[(0, 0), pad],
            dimension_numbers=("NCHW", "OIHW", "NCHW"),
            precision=lax.Precision.HIGHEST)
        y = y + b[i][None, :, None, None]
        y = (y - mean[i][None, :, None, None]) / jnp.sqrt(
            var[i][None, :, None, None] + eps)
        y = y * gamma[i][None, :, None, None] + beta[i][None, :, None, None]
        return jnp.maximum(y, 0.0)

    att_list, dyn_list = [], []
    for i in range(S):
        og = conv_bn_relu(x_grav, P["wg"], P["bg"], P["bn_g"], i, (K // 2, K // 2))
        oy = conv_bn_relu(x_gyro, P["wy"], P["by"], P["bn_y"], i, (Kg // 2 - 1, Kg // 2))
        oa = conv_bn_relu(x_acc, P["wa"], P["ba"], P["bn_a"], i, (K // 2, K // 2))
        att_list += [og, oy]
        dyn_list.append(oa)

    out_att = jnp.stack(att_list, axis=4)                         # (N, FC, 3, T, 2S)
    out_dyn = jnp.concatenate(dyn_list, axis=2)                   # (N, FC, 3S, T)

    oa_r = jnp.transpose(out_att, (0, 3, 4, 2, 1)).reshape(N, T, 2 * S, 3 * FC)
    logits = jnp.einsum("ntsf,f->nts", oa_r, P["attw"][0],
                        precision=lax.Precision.HIGHEST) + P["attb"][0]
    logits = jnp.where(logits > 0, logits, P["prelu_a"] * logits)
    sattn = jax.nn.softmax(logits, axis=2)[..., None]             # (N, T, 2S, 1)

    oa_w = sattn * oa_r
    norm = jnp.mean(sattn[..., 0], axis=1)                        # (N, 2S)
    norm = jnp.sqrt(jnp.sum(norm ** 2, axis=1))                   # (N,)
    oa_w = oa_w * ((S ** 0.5) / norm)[:, None, None, None]
    oa_w = oa_w.reshape(N, T, 2 * S, 3, FC).reshape(N, T, 6 * S, FC)
    oa_w = jnp.transpose(oa_w, (0, 3, 2, 1))                      # (N, FC, 6S, T)

    parts = []
    for j in range(S):
        chunk = oa_w[:, :, 6 * j:6 * j + 6, :]
        parts.append(chunk[:, :, 0:3, :] + chunk[:, :, 3:6, :])
    all_att = jnp.concatenate(parts, axis=2)                      # (N, FC, 3S, T)
    out = jnp.concatenate([all_att, out_dyn], axis=2)             # (N, FC, 6S, T)
    return out, sattn


# ----------------------------------------------------------------------------
if __name__ == "__main__":
    # module hyper-params: input_2Dfeature_channel=C, input_channel=9,
    # feature_channel=FC, kernel_size_grav=K, scale_num=S
    N, C, T = 2, 8, 16
    FC, S, K = 32, 2, 3

    key = jax.random.PRNGKey(0)
    kx, kp = jax.random.split(key)
    x = jax.random.normal(kx, (N, C, 9, T), jnp.float32)

    P = init_params(kp, S, K, C, FC)
    KP = prep_kernel_params(P, S, K, C, FC)

    out, sattn = imu_fusion_block(x, KP, S, K, FC)
    out, sattn = jax.block_until_ready((out, sattn))

    ref_out, ref_attn = reference(x, P, S, K, FC)

    assert out.shape == (N, FC, 6 * S, T), out.shape
    assert sattn.shape == (N, T, 2 * S, 1), sattn.shape
    err_out = float(jnp.max(jnp.abs(out - ref_out)))
    err_attn = float(jnp.max(jnp.abs(sattn - ref_attn)))
    assert err_out < 2e-3 and err_attn < 2e-3, (err_out, err_attn)

    print("KERNEL_OK")
</pallas_src>

<mosaic_0001>
module attributes {stable_mosaic.version = 11 : i64} {
  func.func @kernel(%arg0: i32, %arg1: memref<1x16x216xf32, #tpu.memory_space<vmem>>, %arg2: memref<216x576xf32, #tpu.memory_space<vmem>>, %arg3: memref<1x576xf32, #tpu.memory_space<vmem>>, %arg4: memref<384x4xf32, #tpu.memory_space<vmem>>, %arg5: memref<4x192xf32, #tpu.memory_space<vmem>>, %arg6: memref<4x192xf32, #tpu.memory_space<vmem>>, %arg7: memref<1x2xf32, #tpu.memory_space<smem>>, %arg8: memref<1x16x384xf32, #tpu.memory_space<vmem>>, %arg9: memref<1x16x128xf32, #tpu.memory_space<vmem>>) attributes {dimension_semantics = [#tpu.dimension_semantics<parallel>], iteration_bounds = array<i64: 2>, scalar_prefetch = 0 : i64, scratch_operands = 0 : i64, tpu.core_type = #tpu.core_type<tc>, window_params = [{transform_indices = @transform_0, window_bounds = array<i64: 1, 16, 216>}, {pipeline_mode = #tpu.pipeline_mode<synchronous>, transform_indices = @transform_1, window_bounds = array<i64: 216, 576>}, {pipeline_mode = #tpu.pipeline_mode<synchronous>, transform_indices = @transform_2, window_bounds = array<i64: 1, 576>}, {pipeline_mode = #tpu.pipeline_mode<synchronous>, transform_indices = @transform_3, window_bounds = array<i64: 384, 4>}, {pipeline_mode = #tpu.pipeline_mode<synchronous>, transform_indices = @transform_4, window_bounds = array<i64: 4, 192>}, {pipeline_mode = #tpu.pipeline_mode<synchronous>, transform_indices = @transform_5, window_bounds = array<i64: 4, 192>}, {transform_indices = @transform_6, window_bounds = array<i64: 1, 2>}, {transform_indices = @transform_7, window_bounds = array<i64: 1, 16, 384>}, {transform_indices = @transform_8, window_bounds = array<i64: 1, 16, 128>}]} {
    %c0 = arith.constant 0 : index
    %c0_0 = arith.constant 0 : index
    %0 = memref.load %arg7[%c0, %c0_0] : memref<1x2xf32, #tpu.memory_space<smem>>
    %c0_1 = arith.constant 0 : index
    %c1 = arith.constant 1 : index
    %1 = memref.load %arg7[%c0_1, %c1] : memref<1x2xf32, #tpu.memory_space<smem>>
    %c0_2 = arith.constant 0 : index
    %c0_3 = arith.constant 0 : index
    %c0_4 = arith.constant 0 : index
    %2 = vector.load %arg1[%c0_2, %c0_3, %c0_4] : memref<1x16x216xf32, #tpu.memory_space<vmem>>, vector<1x16x216xf32>
    %3 = vector.shape_cast %2 : vector<1x16x216xf32> to vector<16x216xf32>
    %c0_5 = arith.constant 0 : index
    %c0_6 = arith.constant 0 : index
    %4 = vector.load %arg2[%c0_5, %c0_6] : memref<216x576xf32, #tpu.memory_space<vmem>>, vector<216x576xf32>
    %cst = arith.constant dense<0.000000e+00> : vector<16x576xf32>
    %5 = tpu.matmul %3, %4, %cst {dimension_numbers = #tpu.dot_dimension_numbers<[1], [0], [0], [1], [0, 0, 1, 1], [], []>} : vector<16x216xf32>, vector<216x576xf32>, vector<16x576xf32> -> vector<16x576xf32>
    %c0_7 = arith.constant 0 : index
    %c0_8 = arith.constant 0 : index
    %6 = vector.load %arg3[%c0_7, %c0_8] : memref<1x576xf32, #tpu.memory_space<vmem>>, vector<1x576xf32>
    %7 = vector.broadcast %6 : vector<1x576xf32> to vector<16x576xf32>
    %8 = arith.addf %5, %7 : vector<16x576xf32>
    %cst_9 = arith.constant 0.000000e+00 : f32
    %9 = vector.broadcast %cst_9 : f32 to vector<16x576xf32>
    %10 = arith.maximumf %8, %9 : vector<16x576xf32>
    %11 = vector.extract_strided_slice %10 {offsets = [0, 0], sizes = [16, 384], strides = [1, 1]} : vector<16x576xf32> to vector<16x384xf32>
    %c0_10 = arith.constant 0 : index
    %c0_11 = arith.constant 0 : index
    %12 = vector.load %arg4[%c0_10, %c0_11] : memref<384x4xf32, #tpu.memory_space<vmem>>, vector<384x4xf32>
    %cst_12 = arith.constant dense<0.000000e+00> : vector<16x4xf32>
    %13 = tpu.matmul %11, %12, %cst_12 {dimension_numbers = #tpu.dot_dimension_numbers<[1], [0], [0], [1], [0, 0, 1, 1], [], []>} : vector<16x384xf32>, vector<384x4xf32>, vector<16x4xf32> -> vector<16x4xf32>
    %14 = vector.broadcast %0 : f32 to vector<16x4xf32>
    %15 = arith.addf %13, %14 : vector<16x4xf32>
    %cst_13 = arith.constant 0.000000e+00 : f32
    %16 = vector.broadcast %cst_13 : f32 to vector<16x4xf32>
    %17 = arith.cmpf ogt, %15, %16 : vector<16x4xf32>
    %18 = vector.broadcast %1 : f32 to vector<16x4xf32>
    %19 = arith.mulf %18, %15 : vector<16x4xf32>
    %20 = arith.select %17, %15, %19 : vector<16x4xi1>, vector<16x4xf32>
    %cst_14 = arith.constant dense<0xFF800000> : vector<16xf32>
    %21 = vector.multi_reduction <maximumf>, %20, %cst_14 [1] : vector<16x4xf32> to vector<16xf32>
    %22 = vector.shape_cast %21 : vector<16xf32> to vector<16x1xf32>
    %23 = vector.broadcast %22 : vector<16x1xf32> to vector<16x4xf32>
    %24 = arith.subf %20, %23 : vector<16x4xf32>
    %25 = math.exp %24 : vector<16x4xf32>
    %cst_15 = arith.constant dense<0.000000e+00> : vector<16xf32>
    %26 = vector.multi_reduction <add>, %25, %cst_15 [1] : vector<16x4xf32> to vector<16xf32>
    %27 = vector.shape_cast %26 : vector<16xf32> to vector<16x1xf32>
    %28 = tpu.reciprocal %27 : vector<16x1xf32> -> vector<16x1xf32>
    %29 = vector.broadcast %28 : vector<16x1xf32> to vector<16x4xf32>
    %30 = arith.mulf %25, %29 : vector<16x4xf32>
    %cst_16 = arith.constant 0.000000e+00 : f32
    %31 = vector.broadcast %cst_16 : f32 to vector<16x124xf32>
    %32 = tpu.concatenate %30, %31 in 1 : vector<16x4xf32>, vector<16x124xf32> -> vector<16x128xf32>
    %c0_17 = arith.constant 0 : index
    %c0_18 = arith.constant 0 : index
    %c0_19 = arith.constant 0 : index
    %33 = vector.load %arg9[%c0_17, %c0_18, %c0_19] : memref<1x16x128xf32, #tpu.memory_space<vmem>>, vector<1x16x128xf32>
    %34 = vector.shape_cast %33 : vector<1x16x128xf32> to vector<16x128xf32>
    %35 = vector.shape_cast %32 : vector<16x128xf32> to vector<1x16x128xf32>
    tpu.vector_store %arg9[%c0_17, %c0_18, %c0_19], %35 {strides = array<i32>} : memref<1x16x128xf32, #tpu.memory_space<vmem>>, vector<1x16x128xf32>,
    %cst_20 = arith.constant dense<0.000000e+00> : vector<4xf32>
    %36 = vector.multi_reduction <add>, %30, %cst_20 [0] : vector<16x4xf32> to vector<4xf32>
    %37 = vector.shape_cast %36 : vector<4xf32> to vector<1x4xf32>
    %cst_21 = arith.constant 1.600000e+01 : f32
    %38 = vector.broadcast %cst_21 : f32 to vector<1x4xf32>
    %39 = arith.divf %37, %38 : vector<1x4xf32>
    %40 = arith.mulf %39, %39 : vector<1x4xf32>
    %cst_22 = arith.constant dense<0.000000e+00> : vector<1xf32>
    %41 = vector.multi_reduction <add>, %40, %cst_22 [1] : vector<1x4xf32> to vector<1xf32>
    %42 = vector.shape_cast %41 : vector<1xf32> to vector<1x1xf32>
    %43 = math.rsqrt %42 : vector<1x1xf32>
    %cst_23 = arith.constant 1.41421354 : f32
    %44 = vector.broadcast %cst_23 : f32 to vector<1x1xf32>
    %45 = arith.mulf %44, %43 : vector<1x1xf32>
    %46 = vector.broadcast %45 : vector<1x1xf32> to vector<16x4xf32>
    %47 = arith.mulf %30, %46 : vector<16x4xf32>
    %c0_24 = arith.constant 0 : index
    %c0_25 = arith.constant 0 : index
    %48 = vector.load %arg5[%c0_24, %c0_25] : memref<4x192xf32, #tpu.memory_space<vmem>>, vector<4x192xf32>
    %cst_26 = arith.constant dense<0.000000e+00> : vector<16x192xf32>
    %49 = tpu.matmul %47, %48, %cst_26 {dimension_numbers = #tpu.dot_dimension_numbers<[1], [0], [0], [1], [0, 0, 1, 1], [], []>} : vector<16x4xf32>, vector<4x192xf32>, vector<16x192xf32> -> vector<16x192xf32>
    %c0_27 = arith.constant 0 : index
    %c0_28 = arith.constant 0 : index
    %50 = vector.load %arg6[%c0_27, %c0_28] : memref<4x192xf32, #tpu.memory_space<vmem>>, vector<4x192xf32>
    %cst_29 = arith.constant dense<0.000000e+00> : vector<16x192xf32>
    %51 = tpu.matmul %47, %50, %cst_29 {dimension_numbers = #tpu.dot_dimension_numbers<[1], [0], [0], [1], [0, 0, 1, 1], [], []>} : vector<16x4xf32>, vector<4x192xf32>, vector<16x192xf32> -> vector<16x192xf32>
    %52 = vector.extract_strided_slice %10 {offsets = [0, 0], sizes = [16, 192], strides = [1, 1]} : vector<16x576xf32> to vector<16x192xf32>
    %53 = arith.mulf %49, %52 : vector<16x192xf32>
    %54 = vector.extract_strided_slice %10 {offsets = [0, 192], sizes = [16, 192], strides = [1, 1]} : vector<16x576xf32> to vector<16x192xf32>
    %55 = arith.mulf %51, %54 : vector<16x192xf32>
    %56 = arith.addf %53, %55 : vector<16x192xf32>
    %57 = vector.extract_strided_slice %10 {offsets = [0, 384], sizes = [16, 192], strides = [1, 1]} : vector<16x576xf32> to vector<16x192xf32>
    %58 = tpu.concatenate %56, %57 in 1 : vector<16x192xf32>, vector<16x192xf32> -> vector<16x384xf32>
    %c0_30 = arith.constant 0 : index
    %c0_31 = arith.constant 0 : index
    %c0_32 = arith.constant 0 : index
    %59 = vector.load %arg8[%c0_30, %c0_31, %c0_32] : memref<1x16x384xf32, #tpu.memory_space<vmem>>, vector<1x16x384xf32>
    %60 = vector.shape_cast %59 : vector<1x16x384xf32> to vector<16x384xf32>
    %61 = vector.shape_cast %58 : vector<16x384xf32> to vector<1x16x384xf32>
    tpu.vector_store %arg8[%c0_30, %c0_31, %c0_32], %61 {strides = array<i32>} : memref<1x16x384xf32, #tpu.memory_space<vmem>>, vector<1x16x384xf32>,
    return
  }
  func.func @transform_0(%arg0: i32) -> (i32, i32, i32) {
    %c0_i32 = arith.constant 0 : i32
    %c0_i32_0 = arith.constant 0 : i32
    %c0_i32_1 = arith.constant 0 : i32
    return %arg0, %c0_i32, %c0_i32_0 : i32, i32, i32
  }
  func.func @transform_1(%arg0: i32) -> (i32, i32) {
    %c0_i32 = arith.constant 0 : i32
    %c0_i32_0 = arith.constant 0 : i32
    %c0_i32_1 = arith.constant 0 : i32
    return %c0_i32, %c0_i32_0 : i32, i32
  }
  func.func @transform_2(%arg0: i32) -> (i32, i32) {
    %c0_i32 = arith.constant 0 : i32
    %c0_i32_0 = arith.constant 0 : i32
    %c0_i32_1 = arith.constant 0 : i32
    return %c0_i32, %c0_i32_0 : i32, i32
  }
  func.func @transform_3(%arg0: i32) -> (i32, i32) {
    %c0_i32 = arith.constant 0 : i32
    %c0_i32_0 = arith.constant 0 : i32
    %c0_i32_1 = arith.constant 0 : i32
    return %c0_i32, %c0_i32_0 : i32, i32
  }
  func.func @transform_4(%arg0: i32) -> (i32, i32) {
    %c0_i32 = arith.constant 0 : i32
    %c0_i32_0 = arith.constant 0 : i32
    %c0_i32_1 = arith.constant 0 : i32
    return %c0_i32, %c0_i32_0 : i32, i32
  }
  func.func @transform_5(%arg0: i32) -> (i32, i32) {
    %c0_i32 = arith.constant 0 : i32
    %c0_i32_0 = arith.constant 0 : i32
    %c0_i32_1 = arith.constant 0 : i32
    return %c0_i32, %c0_i32_0 : i32, i32
  }
  func.func @transform_6(%arg0: i32) -> (i32, i32) {
    %c0_i32 = arith.constant 0 : i32
    %c0_i32_0 = arith.constant 0 : i32
    %c0_i32_1 = arith.constant 0 : i32
    return %c0_i32, %c0_i32_0 : i32, i32
  }
  func.func @transform_7(%arg0: i32) -> (i32, i32, i32) {
    %c0_i32 = arith.constant 0 : i32
    %c0_i32_0 = arith.constant 0 : i32
    %c0_i32_1 = arith.constant 0 : i32
    return %arg0, %c0_i32, %c0_i32_0 : i32, i32, i32
  }
  func.func @transform_8(%arg0: i32) -> (i32, i32, i32) {
    %c0_i32 = arith.constant 0 : i32
    %c0_i32_0 = arith.constant 0 : i32
    %c0_i32_1 = arith.constant 0 : i32
    return %arg0, %c0_i32, %c0_i32_0 : i32, i32, i32
  }
}

</mosaic_0001>

<bundles_post_ra>
// kernel: tpu_custom_call.1
= control target key start
LH: loop header
LB: loop body
LE: loop exit
PB: predicated region body
PF: predicated region fallthrough
CT: control target
= control target key end

     0   :  { %14 = vsyncpa [#allocation3], 0  ;;  %s2326_s0 = inlined_call_operand.vmem [shape: f32[2,16,216], index: 0, kind: input, shape index: {}]   ;;  %s2327_s1 = inlined_call_operand.hbm [shape: f32[216,576], index: 1, kind: input, shape index: {}]   ;;  %s2328_s2 = inlined_call_operand.vmem [shape: f32[1,576], index: 2, kind: input, shape index: {}]   ;;  %s2329_s3 = inlined_call_operand.vmem [shape: f32[384,4], index: 3, kind: input, shape index: {}]   ;;  %s2330_s4 = inlined_call_operand.vmem [shape: f32[4,192], index: 4, kind: input, shape index: {}]   ;;  %s2331_s5 = inlined_call_operand.vmem [shape: f32[4,192], index: 5, kind: input, shape index: {}]   ;;  %s2332_s6 = inlined_call_operand.vmem [shape: f32[1,2], index: 6, kind: input, shape index: {}]   ;;  %s2333_s7 = inlined_call_operand.hbm [shape: f32[2,16,384], index: 7, kind: output, shape index: {0}]   ;;  %s2334_s8 = inlined_call_operand.hbm [shape: f32[2,16,128], index: 8, kind: output, shape index: {1}]  }
   0x1   :  { %15 = vsyncpa [#allocation5], 0 }
   0x2   :  { %16 = vsyncpa [#allocation4], 0 }
   0x3   :  { %18 = vsyncpa [#allocation4 + $0x1], 0 }
   0x4   :  { %19 = vsyncpa [#allocation9], 0 }
   0x5   :  { %21 = vsyncpa [#allocation9 + $0x1], 0  ;;  %s1805_s27 = smov 0   ;;  %s1807_s28 = smov 0  }
   0x6   :  { %s1809_s29 = smov 0   ;;  %s1811_s30 = smov 0  }
   0x7 LB: > { %s1826_s9 = sadd.s32 4294967295, %s1746_s30   ;;  %s1393_s10 = sadd.s32 4294967294, %s1746_s30   ;;  %s1746_s30 = sphi %s1811_s30, %s2349_s30   ;;  %s1742_s29 = sphi %s1809_s29, %s2348_s29   ;;  %s1738_s28 = sphi %s1807_s28, %s2347_s28   ;;  %s1734_s27 = sphi %s1805_s27, %s2346_s27  }
   0x8   : > { %s1830_s11 = sadd.s32 1, %s1746_s30   ;;  %s186_s12 = sadd.s32 1, %s1742_s29 }
   0x9   : > { %s183_s13 = ssub.s32 %s1746_s30, %s1830_s11  ;;  %p196_p0 = scmp.ne.s32.totalorder %s1742_s29, %s1738_s28 }
   0xa   : > { %p184_p1 = scmp.eq.s32.totalorder %s183_s13, 0  ;;  %p197_p2 = scmp.eq.s32.totalorder %s1826_s9, 1 }
   0xb   : > { %p202_p3 = scmp.ne.s32.totalorder %s1738_s28, %s1734_s27  ;;  %p203_p4 = scmp.eq.s32.totalorder %s1393_s10, 1 }
   0xc   : > { %s1841_s14 = scalar_select %p184_p1, %s1742_s29, %s186_s12  }
   0xd   : > { %p1843_p5 = por %p197_p2, %p196_p0  ;;  %p1847_p6 = por %p203_p4, %p202_p3 }
   0xe   : > { %p1394_p7 = scmp.ge.s32.totalorder %s1746_s30, 1  ;;  %p236_p8 = scmp.lt.s32.totalorder %s1746_s30, 3 }
   0xf   : > { %s2337_s16 = scalar_select %p1847_p6, 1, 0 }
  0x10   : > { %p2335_p9 = scmp.eq.s32.totalorder %s1826_s9, 0  ;;  %p1854_p10 = pnand %p1394_p7, %p236_p8 }
  0x11   : > { %s1748_s18 = smov [#allocation2]   ;;  %s274_s22 = sshll.u32 %s2332_s6, 4  ;;  %s275_s22 = int_to_ptr.vmem [resolvable:$true] %s274_s22 }
  0x12   : > { %s248_s19 = sshll.u32 %s1748_s18, 4  ;;  %p1534_p11 = pneg %p1854_p10  ;;  %s249_s19 = int_to_ptr.vmem [resolvable:$true] %s248_s19 }
  0x13   : > { %s1618_s24 = scalar_lea.vmem %s249_s19, 17280  ;;  %p1626_p3 = scmp.lt.s32.totalorder %s249_s19, %s249_s19 }
  0x14   : > { %p1865_p12 = pnand %p2335_p9, %p1534_p11  ;;  %p1619_p0 = scmp.ne.s32.totalorder %s249_s19, %s1618_s24 }
  0x15   : > { %p1627_p4 = scmp.lt.s32.totalorder %s1618_s24, %s1618_s24 }
  0x16   : > { %p1609_p13 = pneg %p1865_p12 }
  0x17   : > { %p1628_p7 = por %p1627_p4, %p1626_p3 }
  0x18   : > { %p1621_p1 = pnand %p1619_p0, %p1609_p13 }
  0x1a   : > { %p1622_p2 = pneg %p1621_p1 }
  0x1c   : > { %p1629_p8 = pnand %p1628_p7, %p1622_p2 }
  0x1e   : > { %1632 = shalt.err (!%p1629_p8)
}
  0x1f   : > { %s1749_s25 = smov 640   ;;  %s1750_s26 = smov 40  }
  0x20   : > { %1537 = dma.hbm_to_vmem [thread:$0]  (!%p1865_p12), %s2327_s1, 17280, %s249_s19, [#allocation3], %s1749_s25, %s1749_s25, %s1750_s26  }
  0x21   : > { %s1633_s13 = scalar_lea.vmem %s275_s22, 16  ;;  %p1641_p9 = scmp.lt.s32.totalorder %s275_s22, %s275_s22 }
  0x22   : > { %p1634_p11 = scmp.ne.s32.totalorder %s275_s22, %s1633_s13  ;;  %p1642_p6 = scmp.lt.s32.totalorder %s1633_s13, %s1633_s13 }
  0x24   : > { %p1636_p0 = pnand %p1634_p11, %p1609_p13  ;;  %p1643_p3 = por %p1642_p6, %p1641_p9 }
  0x26   : > { %p1637_p1 = pneg %p1636_p0 }
  0x28   : > { %p1644_p2 = pnand %p1643_p3, %p1637_p1 }
  0x2a   : > { %1647 = shalt.err (!%p1644_p2)
}
  0x2b   : > { %s1751_s18 = smov [#allocation6]   ;;  %295 = sbr.rel (%p1854_p10) target bundleno = 1256 (0x4e8), region = 48 }
  0x2c   : > { %1540 = dma.vmem_to_smem (!%p1865_p12), %s275_s22, 16, %s1751_s18, [#allocation5]  }
  0x2d   : > { %p2340_p4 = scmp.eq.s32.totalorder (!%p1854_p10), %s1826_s9, 0 }
  0x30   : > { %1717 = dma.done.wait (%p2340_p4), [#allocation3], 17280   ;;  %p2341_p7 = pmov %p2340_p4 }
  0x31   : > { %p2342_p13 = pmov %p2340_p4 }
  0x32   : > { %1719 = vsyncadd (%p2341_p7), [#allocation3], 4294950016 }
  0x33   : > { %1721 = dma.done.wait (%p2342_p13), [#allocation5], 16   ;;  %p2343_p6 = pmov %p2340_p4 }
  0x35   : > { %1723 = vsyncadd (%p2343_p6), [#allocation5], 4294967280 }
  0x36   : > { %305 = sfence }
  0x37   : > { %v426_v0 = vld [vmem:[#allocation2 + $0x260] sm:$0xff]  ;;  %v425_v1 = vld [vmem:[#allocation2 + $0x258] sm:$0xff]  ;;  %v420_v3 = vld [vmem:[#allocation2 + $0x230] sm:$0xff]  ;;  %p339_p9 = scmp.lt.s32.totalorder %s1826_s9, 1  ;;  %vm512_vm0 = vcmask 719872   ;;  %s344_s18 = sld [smem:[#allocation6]] }
  0x38   : > { %v421_v2 = vld [vmem:[#allocation2 + $0x238] sm:$0xff]  ;;  %519 = vmatprep.subr.mxu0 %v426_v0  ;;  %v416_v4 = vld [vmem:[#allocation2 + $0x210] sm:$0xff]  ;;  %v415_v5 = vld [vmem:[#allocation2 + $0x208] sm:$0xff]  ;;  %vm964_vm3 = vcmask 31744   ;;  %s2170_s20 = sand.u32 1, %s1738_s28   ;;  %vm1017_vm4 = vcmask 1043456  }
  0x39   : > { %520 = vmatpush1.msra.mxu0 %v425_v1  ;;  %v411_v6 = vld [vmem:[#allocation2 + $0x1e8] sm:$0xff]  ;;  %v410_v7 = vld [vmem:[#allocation2 + $0x1e0] sm:$0xff]  ;;  %v405_v9 = vld [vmem:[#allocation2 + $0x1b8] sm:$0xff]  ;;  %s1898_s17 = scalar_select %p339_p9, %s1826_s9, 1  ;;  %vm1199_vm5 = vcmask 523264  }
  0x3a   : > { %521 = vmatprep.subr.mxu0 %v421_v2  ;;  %v406_v8 = vld [vmem:[#allocation2 + $0x1c0] sm:$0xff]  ;;  %v401_v10 = vld [vmem:[#allocation2 + $0x198] sm:$0xff]  ;;  %v400_v11 = vld [vmem:[#allocation2 + $0x190] sm:$0xff]  ;;  %s1401_s21 = sshll.u32 %s2170_s20, 4  ;;  %s1520_s10 = smul.u32 48, %s2170_s20 }
  0x3b   : > { %522 = vmatpush1.msra.mxu0 %v420_v3  ;;  %v428_v12 = vld [vmem:[#allocation2 + $0x270] sm:$0xff]  ;;  %v427_v14 = vld [vmem:[#allocation2 + $0x268] sm:$0xff]  ;;  %v422_v17 = vld [vmem:[#allocation2 + $0x240] sm:$0xff]  ;;  %s1425_s19 = sshll.u32 %s1898_s17, 5  ;;  %s1404_s17 = sld [smem:[#allocation6 + $0x1]] }
  0x3c   : > { %523 = vmatprep.subr.mxu0 %v416_v4  ;;  %v396_v13 = vld [vmem:[#allocation2 + $0x170] sm:$0xff]  ;;  %596 = vmatprep.subr.mxu1 %v428_v12  ;;  %v395_v15 = vld [vmem:[#allocation2 + $0x168] sm:$0xff]  ;;  %v418_v19 = vld [vmem:[#allocation2 + $0x220] sm:$0xff]  ;;  %s1904_s22 = scalar_lea.vmem %s2326_s0, %s1425_s19  ;;  %s1753_s19 = smov 64  }
  0x3d   : > { %524 = vmatpush1.msra.mxu0 %v415_v5  ;;  %597 = vmatpush1.msra.mxu1 %v427_v14  ;;  %v423_v16 = vld [vmem:[#allocation2 + $0x248] sm:$0xff]  ;;  %v390_v20 = vld [vmem:[#allocation2 + $0x140] sm:$0xff]  ;;  %v417_v21 = vld [vmem:[#allocation2 + $0x218] sm:$0xff]  ;;  %s2209_s12 = scalar_lea.vmem [#allocation7], %s1520_s10  ;;  %s1426_s13 = sshll.u32 %s1826_s9, 8 }
  0x3e   : > { %525 = vmatprep.subr.mxu0 %v411_v6  ;;  %v391_v18 = vld [vmem:[#allocation2 + $0x148] sm:$0xff]  ;;  %598 = vmatprep.subr.mxu1 %v423_v16  ;;  %v413_v22 = vld [vmem:[#allocation2 + $0x1f8] sm:$0xff]  ;;  %v386_v23 = vld [vmem:[#allocation2 + $0x120] sm:$0xff]  ;;  %s1754_s25 = smov [#allocation8]  }
  0x3f   : > { %526 = vmatpush1.msra.mxu0 %v410_v7  ;;  %599 = vmatpush1.msra.mxu1 %v422_v17  ;;  %v412_v24 = vld [vmem:[#allocation2 + $0x1f0] sm:$0xff]  ;;  %v385_v25 = vld [vmem:[#allocation2 + $0x118] sm:$0xff]  ;;  %v407_v28 = vld [vmem:[#allocation2 + $0x1c8] sm:$0xff]  ;;  %s1652_s26 = sshll.u32 %s1754_s25, 4  ;;  %s1653_s26 = int_to_ptr.vmem [resolvable:$false] %s1652_s26 }
  0x40   : > { %527 = vmatprep.subr.mxu0 %v406_v8  ;;  %600 = vmatprep.subr.mxu1 %v418_v19  ;;  %v408_v26 = vld [vmem:[#allocation2 + $0x1d0] sm:$0xff]  ;;  %v381_v27 = vld [vmem:[#allocation2 + $0xf8] sm:$0xff]  ;;  %v403_v30 = vld [vmem:[#allocation2 + $0x1a8] sm:$0xff] }
  0x41   : > { %528 = vmatpush1.msra.mxu0 %v405_v9  ;;  %601 = vmatpush1.msra.mxu1 %v417_v21  ;;  %v380_v29 = vld [vmem:[#allocation2 + $0xf0] sm:$0xff]  ;;  %v402_v32 = vld [vmem:[#allocation2 + $0x1a0] sm:$0xff]  ;;  %v375_v33 = vld [vmem:[#allocation2 + $0xc8] sm:$0xff] }
  0x42   : > { %529 = vmatprep.subr.mxu0 %v401_v10  ;;  %602 = vmatprep.subr.mxu1 %v413_v22  ;;  %v376_v31 = vld [vmem:[#allocation2 + $0xd0] sm:$0xff]  ;;  %v398_v34 = vld [vmem:[#allocation2 + $0x180] sm:$0xff]  ;;  %v371_v35 = vld [vmem:[#allocation2 + $0xa8] sm:$0xff] }
  0x43   : > { %530 = vmatpush1.msra.mxu0 %v400_v11  ;;  %603 = vmatpush1.msra.mxu1 %v412_v24  ;;  %v397_v36 = vld [vmem:[#allocation2 + $0x178] sm:$0xff]  ;;  %v370_v37 = vld [vmem:[#allocation2 + $0xa0] sm:$0xff]  ;;  %v392_v40 = vld [vmem:[#allocation2 + $0x150] sm:$0xff] }
  0x44   : > { %531 = vmatprep.subr.mxu0 %v396_v13  ;;  %604 = vmatprep.subr.mxu1 %v408_v26  ;;  %v393_v38 = vld [vmem:[#allocation2 + $0x158] sm:$0xff]  ;;  %v366_v39 = vld [vmem:[#allocation2 + $0x80] sm:$0xff]  ;;  %v388_v42 = vld [vmem:[#allocation2 + $0x130] sm:$0xff] }
  0x45   : > { %532 = vmatpush1.msra.mxu0 %v395_v15  ;;  %605 = vmatpush1.msra.mxu1 %v407_v28  ;;  %v365_v41 = vld [vmem:[#allocation2 + $0x78] sm:$0xff]  ;;  %v387_v44 = vld [vmem:[#allocation2 + $0x128] sm:$0xff]  ;;  %v360_v45 = vld [vmem:[#allocation2 + $0x50] sm:$0xff] }
  0x46   : > { %533 = vmatprep.subr.mxu0 %v391_v18  ;;  %606 = vmatprep.subr.mxu1 %v403_v30  ;;  %v361_v43 = vld [vmem:[#allocation2 + $0x58] sm:$0xff]  ;;  %v383_v46 = vld [vmem:[#allocation2 + $0x108] sm:$0xff]  ;;  %v356_v47 = vld [vmem:[#allocation2 + $0x30] sm:$0xff] }
  0x47   : > { %534 = vmatpush1.msra.mxu0 %v390_v20  ;;  %607 = vmatpush1.msra.mxu1 %v402_v32  ;;  %v382_v48 = vld [vmem:[#allocation2 + $0x100] sm:$0xff]  ;;  %v355_v49 = vld [vmem:[#allocation2 + $0x28] sm:$0xff]  ;;  %v377_v52 = vld [vmem:[#allocation2 + $0xd8] sm:$0xff] }
  0x48   : > { %535 = vmatprep.subr.mxu0 %v386_v23  ;;  %608 = vmatprep.subr.mxu1 %v398_v34  ;;  %v378_v50 = vld [vmem:[#allocation2 + $0xe0] sm:$0xff]  ;;  %v351_v51 = vld [vmem:[#allocation2 + $0x8] sm:$0xff]  ;;  %v373_v54 = vld [vmem:[#allocation2 + $0xb8] sm:$0xff] }
  0x49   : > { %536 = vmatpush1.msra.mxu0 %v385_v25  ;;  %609 = vmatpush1.msra.mxu1 %v397_v36  ;;  %v350_v53 = vld [vmem:[#allocation2] sm:$0xff]  ;;  %v481_v55 = vld [vmem:[#allocation2 + $0x418] sm:$0xff]  ;;  %v372_v56 = vld [vmem:[#allocation2 + $0xb0] sm:$0xff] }
  0x4a   : > { %537 = vmatprep.subr.mxu0 %v381_v27  ;;  %610 = vmatprep.subr.mxu1 %v393_v38  ;;  %v480_v57 = vld [vmem:[#allocation2 + $0x410] sm:$0xff]  ;;  %v1907_v60 = vld [vmem:[%s1904_s22 + $0x8] sm:$0xff]  ;;  %v470_v1 = vld [vmem:[#allocation2 + $0x3c0] sm:$0xff] }
  0x4b   : > { %538 = vmatpush1.msra.mxu0 %v380_v29  ;;  %611 = vmatpush1.msra.mxu1 %v392_v40  ;;  %v368_v58 = vld [vmem:[#allocation2 + $0x90] sm:$0xff]  ;;  %v475_v61 = vld [vmem:[#allocation2 + $0x3e8] sm:$0xff]  ;;  %v362_v2 = vld [vmem:[#allocation2 + $0x60] sm:$0xff] }
  0x4c   : > { %539 = vmatprep.subr.mxu0 %v376_v31  ;;  %612 = vmatprep.subr.mxu1 %v388_v42  ;;  %v476_v59 = vld [vmem:[#allocation2 + $0x3f0] sm:$0xff]  ;;  %v367_v62 = vld [vmem:[#allocation2 + $0x88] sm:$0xff]  ;;  %v466_v3 = vld [vmem:[#allocation2 + $0x3a0] sm:$0xff] }
  0x4d   : > { %540 = vmatpush1.msra.mxu0 %v375_v33  ;;  %613 = vmatpush1.msra.mxu1 %v387_v44  ;;  %v471_v63 = vld [vmem:[#allocation2 + $0x3c8] sm:$0xff]  ;;  %v358_v4 = vld [vmem:[#allocation2 + $0x40] sm:$0xff]  ;;  %v465_v5 = vld [vmem:[#allocation2 + $0x398] sm:$0xff] }
  0x4e   : > { %541 = vmatprep.subr.mxu0 %v371_v35  ;;  %614 = vmatprep.subr.mxu1 %v383_v46  ;;  %v363_v0 = vld [vmem:[#allocation2 + $0x68] sm:$0xff]  ;;  %v357_v6 = vld [vmem:[#allocation2 + $0x38] sm:$0xff]  ;;  %v460_v9 = vld [vmem:[#allocation2 + $0x370] sm:$0xff] }
  0x4f   : > { %542 = vmatpush1.msra.mxu0 %v370_v37  ;;  %615 = vmatpush1.msra.mxu1 %v382_v48  ;;  %v461_v7 = vld [vmem:[#allocation2 + $0x378] sm:$0xff]  ;;  %v352_v10 = vld [vmem:[#allocation2 + $0x10] sm:$0xff]  ;;  %v483_v12 = vld [vmem:[#allocation2 + $0x428] sm:$0xff] }
  0x50   : > { %543 = vmatprep.subr.mxu0 %v366_v39  ;;  %616 = vmatprep.subr.mxu1 %v378_v50  ;;  %v353_v8 = vld [vmem:[#allocation2 + $0x18] sm:$0xff]  ;;  %v456_v11 = vld [vmem:[#allocation2 + $0x350] sm:$0xff]  ;;  %v455_v13 = vld [vmem:[#allocation2 + $0x348] sm:$0xff] }
  0x51   : > { %544 = vmatpush1.msra.mxu0 %v365_v41  ;;  %617 = vmatpush1.msra.mxu1 %v377_v52  ;;  %v482_v14 = vld [vmem:[#allocation2 + $0x420] sm:$0xff]  ;;  %v451_v15 = vld [vmem:[#allocation2 + $0x328] sm:$0xff]  ;;  %v477_v18 = vld [vmem:[#allocation2 + $0x3f8] sm:$0xff] }
  0x52   : > { %545 = vmatprep.subr.mxu0 %v361_v43  ;;  %618 = vmatprep.subr.mxu1 %v373_v54  ;;  %v478_v16 = vld [vmem:[#allocation2 + $0x400] sm:$0xff]  ;;  %v473_v20 = vld [vmem:[#allocation2 + $0x3d8] sm:$0xff]  ;;  %v472_v22 = vld [vmem:[#allocation2 + $0x3d0] sm:$0xff] }
  0x53   : > { %546 = vmatpush1.msra.mxu0 %v360_v45  ;;  %619 = vmatpush1.msra.mxu1 %v372_v56  ;;  %v450_v17 = vld [vmem:[#allocation2 + $0x320] sm:$0xff]  ;;  %v445_v21 = vld [vmem:[#allocation2 + $0x2f8] sm:$0xff]  ;;  %v468_v24 = vld [vmem:[#allocation2 + $0x3b0] sm:$0xff] }
  0x54   : > { %547 = vmatprep.subr.mxu0 %v356_v47  ;;  %620 = vmatprep.subr.mxu1 %v368_v58  ;;  %v446_v19 = vld [vmem:[#allocation2 + $0x300] sm:$0xff]  ;;  %v441_v23 = vld [vmem:[#allocation2 + $0x2d8] sm:$0xff]  ;;  %v440_v25 = vld [vmem:[#allocation2 + $0x2d0] sm:$0xff] }
  0x55   : > { %548 = vmatpush1.msra.mxu0 %v355_v49  ;;  %1405 = vmatprep.mubr.msk.f32.mxu0 %vm512_vm0, %v1907_v60  ;;  %v467_v26 = vld [vmem:[#allocation2 + $0x3a8] sm:$0xff]  ;;  %v436_v27 = vld [vmem:[#allocation2 + $0x2b0] sm:$0xff]  ;;  %v462_v30 = vld [vmem:[#allocation2 + $0x380] sm:$0xff] }
  0x56   : > { %549 = vmatprep.subr.mxu0 %v351_v51  ;;  %621 = vmatpush1.msra.mxu1 %v367_v62  ;;  %v463_v28 = vld [vmem:[#allocation2 + $0x388] sm:$0xff]  ;;  %v458_v32 = vld [vmem:[#allocation2 + $0x360] sm:$0xff]  ;;  %v457_v34 = vld [vmem:[#allocation2 + $0x358] sm:$0xff] }
  0x57   : > { %550 = vmatpush1.msra.mxu0 %v350_v53  ;;  %622 = vmatprep.subr.mxu1 %v363_v0  ;;  %v435_v29 = vld [vmem:[#allocation2 + $0x2a8] sm:$0xff]  ;;  %v430_v33 = vld [vmem:[#allocation2 + $0x280] sm:$0xff]  ;;  %v453_v36 = vld [vmem:[#allocation2 + $0x338] sm:$0xff] }
  0x58   : > { %561 = vmatprep.subr.mxu0 %v481_v55  ;;  %623 = vmatpush1.msra.mxu1 %v362_v2  ;;  %v431_v31 = vld [vmem:[#allocation2 + $0x288] sm:$0xff]  ;;  %v1912_v35 = vld [vmem:[%s1904_s22] sm:$0xff]  ;;  %v452_v37 = vld [vmem:[#allocation2 + $0x330] sm:$0xff] }
  0x59   : > { %562 = vmatpush2.msra.mxu0 %v480_v57  ;;  %624 = vmatprep.subr.mxu1 %v358_v4  ;;  %v1915_v38 = vld [vmem:[%s1904_s22 + $0x18] sm:$0xff]  ;;  %v448_v39 = vld [vmem:[#allocation2 + $0x310] sm:$0xff]  ;;  %v447_v40 = vld [vmem:[#allocation2 + $0x308] sm:$0xff] }
  0x5a   : > { %563 = vmatprep.subr.mxu0 %v476_v59  ;;  %625 = vmatpush1.msra.mxu1 %v357_v6  ;;  %v1921_v41 = vld [vmem:[%s1904_s22 + $0x10] sm:$0xff]  ;;  %v443_v42 = vld [vmem:[#allocation2 + $0x2e8] sm:$0xff]  ;;  %v442_v43 = vld [vmem:[#allocation2 + $0x2e0] sm:$0xff]  ;;  %s2174_s22 = scalar_lea.vmem [#allocation8], %s1401_s21  ;;  %s2229_s21 = scalar_lea.hbm %s2334_s8, %s1426_s13 }
  0x5b   : > { %564 = vmatpush2.msra.mxu0 %v475_v61  ;;  %626 = vmatprep.subr.mxu1 %v353_v8  ;;  %v438_v44 = vld [vmem:[#allocation2 + $0x2c0] sm:$0xff]  ;;  %v437_v45 = vld [vmem:[#allocation2 + $0x2b8] sm:$0xff]  ;;  %v432_v47 = vld [vmem:[#allocation2 + $0x290] sm:$0xff] }
  0x5c   : > { %565 = vmatprep.subr.mxu0 %v471_v63  ;;  %627 = vmatpush1.msra.mxu1 %v352_v10  ;;  %v433_v46 = vld [vmem:[#allocation2 + $0x298] sm:$0xff]  ;;  %v788_v50 = vld [vmem:[%s2329_s3 + $0xf0] sm:$0xff]  ;;  %v787_v52 = vld [vmem:[%s2329_s3 + $0xe8] sm:$0xff] }
  0x5d   : > { %566 = vmatpush2.msra.mxu0 %v470_v1  ;;  %638 = vmatprep.subr.mxu1 %v483_v12  ;;  %v789_v48 = vld [vmem:[%s2329_s3 + $0xf8] sm:$0xff]  ;;  %v772_v51 = vld [vmem:[%s2329_s3 + $0x70] sm:$0xff]  ;;  %v771_v53 = vld [vmem:[%s2329_s3 + $0x68] sm:$0xff] }
  0x5e   : > { %567 = vmatprep.subr.mxu0 %v466_v3  ;;  %639 = vmatpush2.msra.mxu1 %v482_v14  ;;  %v773_v49 = vld [vmem:[%s2329_s3 + $0x78] sm:$0xff]  ;;  %v786_v54 = vld [vmem:[%s2329_s3 + $0xe0] sm:$0xff]  ;;  %v784_v58 = vld [vmem:[%s2329_s3 + $0xd0] sm:$0xff] }
  0x5f   : > { %568 = vmatpush2.msra.mxu0 %v465_v5  ;;  %640 = vmatprep.subr.mxu1 %v478_v16  ;;  %v770_v55 = vld [vmem:[%s2329_s3 + $0x60] sm:$0xff]  ;;  %v785_v56 = vld [vmem:[%s2329_s3 + $0xd8] sm:$0xff]  ;;  %v768_v59 = vld [vmem:[%s2329_s3 + $0x50] sm:$0xff] }
  0x60   : > { %569 = vmatprep.subr.mxu0 %v461_v7  ;;  %641 = vmatpush2.msra.mxu1 %v477_v18  ;;  %v769_v57 = vld [vmem:[%s2329_s3 + $0x58] sm:$0xff]  ;;  %v767_v61 = vld [vmem:[%s2329_s3 + $0x48] sm:$0xff]  ;;  %v782_v62 = vld [vmem:[%s2329_s3 + $0xc0] sm:$0xff] }
  0x61   : > { %570 = vmatpush2.msra.mxu0 %v460_v9  ;;  %642 = vmatprep.subr.mxu1 %v473_v20  ;;  %v766_v63 = vld [vmem:[%s2329_s3 + $0x40] sm:$0xff]  ;;  %v781_v0 = vld [vmem:[%s2329_s3 + $0xb8] sm:$0xff]  ;;  %v780_v2 = vld [vmem:[%s2329_s3 + $0xb0] sm:$0xff] }
  0x62   : > { %571 = vmatprep.subr.mxu0 %v456_v11  ;;  %643 = vmatpush2.msra.mxu1 %v472_v22  ;;  %v765_v1 = vld [vmem:[%s2329_s3 + $0x38] sm:$0xff]  ;;  %v764_v3 = vld [vmem:[%s2329_s3 + $0x30] sm:$0xff]  ;;  %v779_v4 = vld [vmem:[%s2329_s3 + $0xa8] sm:$0xff] }
  0x63   : > { %572 = vmatpush2.msra.mxu0 %v455_v13  ;;  %644 = vmatprep.subr.mxu1 %v468_v24  ;;  %v763_v5 = vld [vmem:[%s2329_s3 + $0x28] sm:$0xff]  ;;  %v778_v6 = vld [vmem:[%s2329_s3 + $0xa0] sm:$0xff]  ;;  %v777_v8 = vld [vmem:[%s2329_s3 + $0x98] sm:$0xff] }
  0x64   : > { %573 = vmatprep.subr.mxu0 %v451_v15  ;;  %645 = vmatpush2.msra.mxu1 %v467_v26  ;;  %v762_v7 = vld [vmem:[%s2329_s3 + $0x20] sm:$0xff]  ;;  %v761_v9 = vld [vmem:[%s2329_s3 + $0x18] sm:$0xff]  ;;  %v776_v10 = vld [vmem:[%s2329_s3 + $0x90] sm:$0xff] }
  0x65   : > { %574 = vmatpush2.msra.mxu0 %v450_v17  ;;  %646 = vmatprep.subr.mxu1 %v463_v28  ;;  %v760_v11 = vld [vmem:[%s2329_s3 + $0x10] sm:$0xff]  ;;  %v775_v12 = vld [vmem:[%s2329_s3 + $0x88] sm:$0xff]  ;;  %v774_v14 = vld [vmem:[%s2329_s3 + $0x80] sm:$0xff]  ;;  %v487_v17 = vlaneseq }
  0x66   : > { %575 = vmatprep.subr.mxu0 %v446_v19  ;;  %647 = vmatpush2.msra.mxu1 %v462_v30  ;;  %v759_v13 = vld [vmem:[%s2329_s3 + $0x8] sm:$0xff]  ;;  %v758_v15 = vld [vmem:[%s2329_s3] sm:$0xff]  ;;  %v805_v16 = vld [vmem:[%s2329_s3 + $0x178] sm:$0xff] }
  0x67   : > { %576 = vmatpush2.msra.mxu0 %v445_v21  ;;  %648 = vmatprep.subr.mxu1 %v458_v32  ;;  %v2031_v18 = vshrl.u32 %v487_v17, 7  ;;  %v2037_v20 = vld [vmem:[%s2328_s2] sm:$0x1f] }
  0x68   : > { %577 = vmatprep.subr.mxu0 %v441_v23  ;;  %649 = vmatpush2.msra.mxu1 %v457_v34  ;;  %v804_v34 = vld [vmem:[%s2329_s3 + $0x170] sm:$0xff] }
  0x69   : > { %578 = vmatpush2.msra.mxu0 %v440_v25  ;;  %650 = vmatprep.subr.mxu1 %v453_v36  ;;  %v489_v19 = vsub.s32 0, %v2031_v18  ;;  %v493_v21 = vsub.s32 1, %v2031_v18  ;;  %v497_v28 = vsub.s32 2, %v2031_v18 }
  0x6a   : > { %579 = vmatprep.subr.mxu0 %v436_v27  ;;  %651 = vmatpush2.msra.mxu1 %v452_v37 }
  0x6b   : > { %580 = vmatpush2.msra.mxu0 %v435_v29  ;;  %652 = vmatprep.subr.mxu1 %v448_v39  ;;  %v490_v22 = vrot.slane %v2037_v20, %v489_v19  ;;  %v494_v23 = vrot.slane %v2037_v20, %v493_v21  ;;  %v498_v37 = vrot.slane %v2037_v20, %v497_v28  ;;  %v806_v19 = vstv %s344_s18  ;;  %s1275_s18 = sshll.u32 %s2174_s22, 4  ;;  %s2231_s18 = int_to_ptr.vmem [resolvable:$true] %s1275_s18 }
  0x6c   : > { %581 = vmatprep.subr.mxu0 %v431_v31  ;;  %1407 = vmatprep.mubr.msk.f32.mxu1 %vm512_vm0, %v1907_v60  ;;  %s1648_s24 = scalar_lea.vmem %s2231_s18, 256  ;;  %p1655_p11 = scmp.lt.s32.totalorder %s2231_s18, %s1653_s26 }
  0x6d   : > { %582 = vmatpush2.msra.mxu0 %v430_v33  ;;  %653 = vmatpush2.msra.mxu1 %v447_v40  ;;  %v803_v40 = vld [vmem:[%s2329_s3 + $0x168] sm:$0xff]  ;;  %p1649_p10 = scmp.ne.s32.totalorder %s2231_s18, %s1648_s24 }
  0x6e   : > { %584 = vmatmul.mubr.f32.vlgmr.msra.gmra.mxu0 %v1912_v35  ;;  %654 = vmatprep.subr.mxu1 %v443_v42 }
  0x6f   : > { %1406 = vmatprep.mubr.msk.f32.mxu0 %vm512_vm0, %v1915_v38  ;;  %655 = vmatpush2.msra.mxu1 %v442_v43  ;;  %p1650_p12 = pnand %p1649_p10, %p1843_p5 }
  0x70   : > { %656 = vmatprep.subr.mxu1 %v438_v44  ;;  %v802_v44 = vld [vmem:[%s2329_s3 + $0x160] sm:$0xff] }
  0x71   : > { %657 = vmatpush2.msra.mxu1 %v437_v45  ;;  %p1651_p8 = pneg %p1650_p12 }
  0x72   : > { %590 = vmatmul.mubr.f32.gmra.mxu0 %v1921_v41  ;;  %658 = vmatprep.subr.mxu1 %v433_v46  ;;  %v801_v46 = vld [vmem:[%s2329_s3 + $0x158] sm:$0xff] }
  0x73   : > { %1409 = vmatprep.mubr.msk.f32.mxu0 %vm512_vm0, %v1907_v60  ;;  %659 = vmatpush2.msra.mxu1 %v432_v47  ;;  %v783_v60 = vld [vmem:[%s2329_s3 + $0xc8] sm:$0xff] }
  0x74   : > { %661 = vmatmul.mubr.f32.vlgmr.msra.gmra.mxu1 %v1912_v35  ;;  %1427 = vmatprep.subr.mxu1 %v789_v48  ;;  %v800_v48 = vld [vmem:[%s2329_s3 + $0x150] sm:$0xff] }
  0x75   : > { %1408 = vmatprep.mubr.msk.f32.mxu1 %vm512_vm0, %v1915_v38  ;;  %1428 = vmatpush3.msra.mxu1 %v773_v49  ;;  %v799_v49 = vld [vmem:[%s2329_s3 + $0x148] sm:$0xff] }
  0x76   : > { %1429 = vmatprep.subr.mxu1 %v788_v50  ;;  %v798_v50 = vld [vmem:[%s2329_s3 + $0x140] sm:$0xff] }
  0x77   : > { %1430 = vmatpush3.msra.mxu1 %v772_v51  ;;  %v797_v51 = vld [vmem:[%s2329_s3 + $0x138] sm:$0xff] }
  0x78   : > { %667 = vmatmul.mubr.f32.gmra.mxu1 %v1921_v41  ;;  %1431 = vmatprep.subr.mxu1 %v787_v52  ;;  %v796_v52 = vld [vmem:[%s2329_s3 + $0x130] sm:$0xff] }
  0x79   : > { %1432 = vmatpush3.msra.mxu1 %v771_v53  ;;  %v795_v53 = vld [vmem:[%s2329_s3 + $0x128] sm:$0xff] }
  0x7a   : > { %1433 = vmatprep.subr.mxu1 %v786_v54  ;;  %v794_v54 = vld [vmem:[%s2329_s3 + $0x120] sm:$0xff] }
  0x7b   : > { %1434 = vmatpush3.msra.mxu1 %v770_v55 }
  0x7c   : > { %1435 = vmatprep.subr.mxu1 %v785_v56  ;;  %v793_v56 = vld [vmem:[%s2329_s3 + $0x118] sm:$0xff] }
  0x7d   : > { %1436 = vmatpush3.msra.mxu1 %v769_v57 }
  0x7e   : > { %1437 = vmatprep.subr.mxu1 %v784_v58  ;;  %v792_v58 = vld [vmem:[%s2329_s3 + $0x110] sm:$0xff] }
  0x7f   : > { %1438 = vmatpush3.msra.mxu1 %v768_v59 }
  0x80   : > { %1439 = vmatprep.subr.mxu1 %v783_v60  ;;  %v791_v60 = vld [vmem:[%s2329_s3 + $0x108] sm:$0xff] }
  0x81   : > { %1440 = vmatpush3.msra.mxu1 %v767_v61  ;;  %v790_v61 = vld [vmem:[%s2329_s3 + $0x100] sm:$0xff] }
  0x82   : > { %1441 = vmatprep.subr.mxu1 %v782_v62 }
  0x83   : > { %1442 = vmatpush3.msra.mxu1 %v766_v63  ;;  %v429_v63 = vld [vmem:[#allocation2 + $0x278] sm:$0xff] }
  0x84   : > { %1443 = vmatprep.subr.mxu1 %v781_v0  ;;  %v1752_v0 = vmov 0.0  }
  0x85   : > { %1444 = vmatpush3.msra.mxu1 %v765_v1  ;;  %673 = vmatprep.subr.mxu0 %v1752_v0  ;;  %v424_v1 = vld [vmem:[#allocation2 + $0x250] sm:$0xff] }
  0x86   : > { %1445 = vmatprep.subr.mxu1 %v780_v2  ;;  %674 = vmatpush1.msra.mxu0 %v429_v63  ;;  %v419_v2 = vld [vmem:[#allocation2 + $0x228] sm:$0xff]  ;;  %v434_v63 = vld [vmem:[#allocation2 + $0x2a0] sm:$0xff] }
  0x87   : > { %1446 = vmatpush3.msra.mxu1 %v764_v3  ;;  %675 = vmatprep.subr.mxu0 %v1752_v0  ;;  %v414_v3 = vld [vmem:[#allocation2 + $0x200] sm:$0xff] }
  0x88   : > { %1447 = vmatprep.subr.mxu1 %v779_v4  ;;  %676 = vmatpush1.msra.mxu0 %v424_v1  ;;  %v409_v4 = vld [vmem:[#allocation2 + $0x1d8] sm:$0xff] }
  0x89   : > { %1448 = vmatpush3.msra.mxu1 %v763_v5  ;;  %677 = vmatprep.subr.mxu0 %v1752_v0  ;;  %v404_v5 = vld [vmem:[#allocation2 + $0x1b0] sm:$0xff] }
  0x8a   : > { %1449 = vmatprep.subr.mxu1 %v778_v6  ;;  %678 = vmatpush1.msra.mxu0 %v419_v2  ;;  %v399_v6 = vld [vmem:[#allocation2 + $0x188] sm:$0xff] }
  0x8b   : > { %1450 = vmatpush3.msra.mxu1 %v762_v7  ;;  %679 = vmatprep.subr.mxu0 %v1752_v0  ;;  %v394_v7 = vld [vmem:[#allocation2 + $0x160] sm:$0xff] }
  0x8c   : > { %1451 = vmatprep.subr.mxu1 %v777_v8  ;;  %680 = vmatpush1.msra.mxu0 %v414_v3  ;;  %v389_v8 = vld [vmem:[#allocation2 + $0x138] sm:$0xff] }
  0x8d   : > { %1452 = vmatpush3.msra.mxu1 %v761_v9  ;;  %681 = vmatprep.subr.mxu0 %v1752_v0  ;;  %v384_v9 = vld [vmem:[#allocation2 + $0x110] sm:$0xff] }
  0x8e   : > { %1453 = vmatprep.subr.mxu1 %v776_v10  ;;  %682 = vmatpush1.msra.mxu0 %v409_v4  ;;  %v379_v10 = vld [vmem:[#allocation2 + $0xe8] sm:$0xff] }
  0x8f   : > { %1454 = vmatpush3.msra.mxu1 %v760_v11  ;;  %683 = vmatprep.subr.mxu0 %v1752_v0 }
  0x90   : > { %1455 = vmatprep.subr.mxu1 %v775_v12  ;;  %684 = vmatpush1.msra.mxu0 %v404_v5 }
  0x91   : > { %1456 = vmatpush3.msra.mxu1 %v759_v13  ;;  %685 = vmatprep.subr.mxu0 %v1752_v0 }
  0x92   : > { %1457 = vmatprep.subr.mxu1 %v774_v14  ;;  %686 = vmatpush1.msra.mxu0 %v399_v6 }
  0x93   : > { %1458 = vmatpush3.msra.mxu1 %v758_v15  ;;  %687 = vmatprep.subr.mxu0 %v1752_v0 }
  0x94   : > { %1483 = vmatprep.subr.mxu1 %v805_v16  ;;  %688 = vmatpush1.msra.mxu0 %v394_v7 }
  0x95   : > { %689 = vmatprep.subr.mxu0 %v1752_v0 }
  0x96   : > { %690 = vmatpush1.msra.mxu0 %v389_v8 }
  0x97   : > { %691 = vmatprep.subr.mxu0 %v1752_v0 }
  0x98   : > { %692 = vmatpush1.msra.mxu0 %v384_v9 }
  0x99   : > { %693 = vmatprep.subr.mxu0 %v1752_v0 }
  0x9a   : > { %694 = vmatpush1.msra.mxu0 %v379_v10 }
  0x9b   : > { %695 = vmatprep.subr.mxu0 %v1752_v0 }
 0x12e   : > { %v585_v24 = vpop.f32.mrf.mxu0 }
 0x12f   : > { %v2042_v25 = vadd.f32 %v585_v24, %v490_v22 }
 0x130   : > { %v587_v26 = vpop.f32.mrf.mxu0 }
 0x131   : > { %v588_v27 = vadd.f32 %v587_v26, %v494_v23  ;;  %v748_v32 = vmax.f32 %v2042_v25, 0.0  ;;  %v959_v26 = vstv %s1404_s17 }
 0x132   : > { %v591_v29 = vpop.f32.mrf.mxu0 }
 0x133   : > { %v2045_v30 = vmax.f32 %v588_v27, 0.0  ;;  %v2047_v31 = vadd.f32 %v591_v29, %v490_v22 }
 0x134   : > { %v593_v33 = vpop.f32.mrf.mxu0  ;;  %v662_v43 = vpop.f32.mrf.mxu1 }
 0x135   : > { %871 = vmatprep.mubr.f32.mxu1 %v2045_v30  ;;  %v594_v36 = vadd.f32 %v593_v33, %v494_v23  ;;  %v753_v39 = vmax.f32 %v2047_v31, 0.0  ;;  %v2066_v45 = vadd.f32 %v662_v43, %v498_v37  ;;  %v374_v43 = vld [vmem:[#allocation2 + $0xc0] sm:$0xff] }
 0x136   : > { %872 = vmatmul.mubr.f32.vlgmr.msra.gmra.mxu1 %v748_v32  ;;  %v2098_v55 = vpop.f32.mrf.mxu1  ;;  %696 = vmatpush1.msra.mxu0 %v374_v43 }
 0x137   : > { %1484 = vmatpush3.msra.mxu1 %v805_v16  ;;  %v2061_v42 = vmax.f32 %v594_v36, 0.0  ;;  %v750_v47 = vmax.f32 %v2066_v45, 0.0  ;;  %697 = vmatprep.subr.mxu0 %v1752_v0 }
 0x138   : > { %1485 = vmatprep.subr.mxu1 %v804_v34  ;;  %v668_v57 = vpop.f32.mrf.mxu1 }
 0x139   : > { %1486 = vmatpush3.msra.mxu1 %v804_v34  ;;  %876 = vmatprep.mubr.f32.mxu1 %v2061_v42  ;;  %v2106_v59 = vadd.f32 %v668_v57, %v498_v37  ;;  %v454_v57 = vld [vmem:[#allocation2 + $0x340] sm:$0xff] }
 0x13a   : > { %1487 = vmatprep.subr.mxu1 %v803_v40  ;;  %877 = vmatmul.mubr.f32.gmra.mxu1 %v753_v39  ;;  %v2130_v11 = vpop.f32.mrf.mxu1 }
 0x13b   : > { %1488 = vmatpush3.msra.mxu1 %v803_v40  ;;  %1515 = vmatprep.mubr.f32.mxu1 %v750_v47  ;;  %v755_v62 = vmax.f32 %v2106_v59, 0.0 }
 0x13c   : > { %1489 = vmatprep.subr.mxu1 %v802_v44 }
 0x13d   : > { %1490 = vmatpush3.msra.mxu1 %v802_v44  ;;  %v369_v44 = vld [vmem:[#allocation2 + $0x98] sm:$0xff] }
 0x13e   : > { %1491 = vmatprep.subr.mxu1 %v801_v46  ;;  %698 = vmatpush1.msra.mxu0 %v369_v44  ;;  %v505_v44 = vsub.s32 4, %v2031_v18 }
 0x13f   : > { %1492 = vmatpush3.msra.mxu1 %v801_v46  ;;  %699 = vmatprep.subr.mxu0 %v1752_v0  ;;  %v364_v46 = vld [vmem:[#allocation2 + $0x70] sm:$0xff] }
 0x140   : > { %1493 = vmatprep.subr.mxu1 %v800_v48  ;;  %700 = vmatpush1.msra.mxu0 %v364_v46  ;;  %v506_v46 = vrot.slane %v2037_v20, %v505_v44 }
 0x141   : > { %1494 = vmatpush3.msra.mxu1 %v800_v48  ;;  %701 = vmatprep.subr.mxu0 %v1752_v0  ;;  %v359_v48 = vld [vmem:[#allocation2 + $0x48] sm:$0xff] }
 0x142   : > { %1495 = vmatprep.subr.mxu1 %v799_v49  ;;  %702 = vmatpush1.msra.mxu0 %v359_v48 }
 0x143   : > { %1496 = vmatpush3.msra.mxu1 %v799_v49  ;;  %703 = vmatprep.subr.mxu0 %v1752_v0  ;;  %v354_v49 = vld [vmem:[#allocation2 + $0x20] sm:$0xff] }
 0x144   : > { %1497 = vmatprep.subr.mxu1 %v798_v50  ;;  %704 = vmatpush1.msra.mxu0 %v354_v49 }
 0x145   : > { %1498 = vmatpush3.msra.mxu1 %v798_v50  ;;  %v484_v50 = vld [vmem:[#allocation2 + $0x430] sm:$0xff]  ;;  %715 = vmatprep.subr.mxu0 %v1752_v0 }
 0x146   : > { %1499 = vmatprep.subr.mxu1 %v797_v51  ;;  %716 = vmatpush2.msra.mxu0 %v484_v50 }
 0x147   : > { %1500 = vmatpush3.msra.mxu1 %v797_v51  ;;  %v479_v51 = vld [vmem:[#allocation2 + $0x408] sm:$0xff]  ;;  %717 = vmatprep.subr.mxu0 %v1752_v0 }
 0x148   : > { %1501 = vmatprep.subr.mxu1 %v796_v52  ;;  %718 = vmatpush2.msra.mxu0 %v479_v51  ;;  %v1008_v51 = vld [vmem:[%s2330_s4] sm:$0xff] }
 0x149   : > { %1502 = vmatpush3.msra.mxu1 %v796_v52  ;;  %v474_v52 = vld [vmem:[#allocation2 + $0x3e0] sm:$0xff]  ;;  %719 = vmatprep.subr.mxu0 %v1752_v0 }
 0x14a   : > { %1503 = vmatprep.subr.mxu1 %v795_v53  ;;  %720 = vmatpush2.msra.mxu0 %v474_v52  ;;  %v1099_v52 = vld [vmem:[%s2331_s5] sm:$0xff] }
 0x14b   : > { %1504 = vmatpush3.msra.mxu1 %v795_v53  ;;  %v469_v53 = vld [vmem:[#allocation2 + $0x3b8] sm:$0xff]  ;;  %721 = vmatprep.subr.mxu0 %v1752_v0 }
 0x14c   : > { %1505 = vmatprep.subr.mxu1 %v794_v54  ;;  %722 = vmatpush2.msra.mxu0 %v469_v53  ;;  %v1010_v53 = vcombine.high %v1008_v51, %v1008_v51 }
 0x14d   : > { %1506 = vmatpush3.msra.mxu1 %v794_v54  ;;  %v464_v54 = vld [vmem:[#allocation2 + $0x390] sm:$0xff]  ;;  %723 = vmatprep.subr.mxu0 %v1752_v0 }
 0x14e   : > { %1507 = vmatprep.subr.mxu1 %v793_v56  ;;  %724 = vmatpush2.msra.mxu0 %v464_v54 }
 0x14f   : > { %1508 = vmatpush3.msra.mxu1 %v793_v56  ;;  %725 = vmatprep.subr.mxu0 %v1752_v0  ;;  %v459_v56 = vld [vmem:[#allocation2 + $0x368] sm:$0xff] }
 0x150   : > { %1509 = vmatprep.subr.mxu1 %v792_v58  ;;  %726 = vmatpush2.msra.mxu0 %v459_v56 }
 0x151   : > { %1510 = vmatpush3.msra.mxu1 %v792_v58  ;;  %727 = vmatprep.subr.mxu0 %v1752_v0  ;;  %v449_v58 = vld [vmem:[#allocation2 + $0x318] sm:$0xff] }
 0x152   : > { %1511 = vmatprep.subr.mxu1 %v791_v60  ;;  %728 = vmatpush2.msra.mxu0 %v454_v57 }
 0x153   : > { %1512 = vmatpush3.msra.mxu1 %v791_v60  ;;  %729 = vmatprep.subr.mxu0 %v1752_v0  ;;  %v444_v60 = vld [vmem:[#allocation2 + $0x2f0] sm:$0xff] }
 0x154   : > { %1513 = vmatprep.subr.mxu1 %v790_v61  ;;  %730 = vmatpush2.msra.mxu0 %v449_v58 }
 0x155   : > { %1514 = vmatpush3.msra.mxu1 %v790_v61  ;;  %731 = vmatprep.subr.mxu0 %v1752_v0  ;;  %v439_v61 = vld [vmem:[#allocation2 + $0x2c8] sm:$0xff] }
 0x156   : > { %1516 = vmatmul.mubr.f32.vlgmr.msra.gmra.mxu1 %v755_v62  ;;  %732 = vmatpush2.msra.mxu0 %v444_v60 }
 0x157   : > { %1176 = vmatprep.mubr.f32.mxu1 %v1752_v0  ;;  %733 = vmatprep.subr.mxu0 %v1752_v0 }
 0x158   : > { %734 = vmatpush2.msra.mxu0 %v439_v61 }
 0x159   : > { %735 = vmatprep.subr.mxu0 %v1752_v0 }
 0x15a   : > { %736 = vmatpush2.msra.mxu0 %v434_v63 }
 0x15b   : > { %738 = vmatmul.mubr.f32.vlgmr.msra.gmra.mxu0 %v1912_v35  ;;  %1411 = vmatprep.subr.msk.mxu0 %vm1017_vm4, %v1010_v53 }
 0x15c   : > { %1410 = vmatprep.mubr.msk.f32.mxu0 %vm512_vm0, %v1915_v38  ;;  %v501_v38 = vsub.s32 3, %v2031_v18  ;;  %v1101_v18 = vcombine.high %v1099_v52, %v1099_v52  ;;  %1412 = vmatpush1.msk.msra.mxu0 %vm1017_vm4, %v1008_v51 }
 0x15e   : > { %1518 = vmatprep.subr.msk.mxu1 %vm1017_vm4, %v1101_v18  ;;  %1415 = vmatprep.subr.msk.mxu0 %vm1017_vm4, %v1101_v18 }
 0x15f   : > { %743 = vmatmul.mubr.f32.gmra.mxu0 %v1921_v41  ;;  %v502_v41 = vrot.slane %v2037_v20, %v501_v38  ;;  %1519 = vmatpush1.msk.msra.mxu1 %vm1017_vm4, %v1099_v52 }
 0x160   : > { %1086 = vmatprep.mubr.f32.mxu0 %v1752_v0 }
 0x161   : > { %v665_v10 = vadd.f32 %v2098_v55, %v502_v41 }
 0x1f6   : > { %v1459_v12 = vpop.f32.mrf.mxu1 }
 0x1f8   : > { %v1460_v13 = vpop.f32.mrf.mxu1 }
 0x1f9   : > { %v1461_v17 = vadd.f32 %v1460_v13, %v1459_v12  ;;  %v751_v12 = vmax.f32 %v665_v10, 0.0  ;;  %v671_v13 = vadd.f32 %v2130_v11, %v502_v41 }
 0x1fa   : > { %v1462_v14 = vpop.f32.mrf.mxu1 }
 0x1fb   : > { %v874_v24 = vadd.f32 %v1461_v17, %v806_v19 }
 0x1fc   : > { %v1463_v15 = vpop.f32.mrf.mxu1 }
 0x1fd   : > { %v1464_v16 = vadd.f32 %v1463_v15, %v1462_v14  ;;  %v756_v14 = vmax.f32 %v671_v13, 0.0 }
 0x1ff   : > { %v879_v21 = vadd.f32 %v1464_v16, %v806_v19 }
 0x216   : > { %v1517_v22 = vpop.f32.mrf.mxu1 }
 0x217   : > { %v954_v23 = vadd.f32 %v1517_v22, %v879_v21 }
 0x218   : > { %v948_v27 = vpop.f32.mrf.mxu1 }
 0x219   : > { %v949_v28 = vadd.f32 %v948_v27, %v874_v24  ;;  %v961_v29 = vmul.f32 %v959_v26, %v954_v23  ;;  %vm958_vm2 = vcmp.gt.f32.partialorder %v954_v23, 0.0 }
 0x21b   : > { %v960_v33 = vmul.f32 %v959_v26, %v949_v28  ;;  %vm957_vm1 = vcmp.gt.f32.partialorder %v949_v28, 0.0  ;;  %v963_v37 = vsel %vm958_vm2, %v954_v23, %v961_v29  ;;  %v739_v15 = vpop.f32.mrf.mxu0 }
 0x21c   : > { %v968_v40 = vsel %vm964_vm3, %v963_v37, -inf  ;;  %v740_v48 = vadd.f32 %v739_v15, %v506_v46 }
 0x21d   : > { %v962_v34 = vsel %vm957_vm1, %v949_v28, %v960_v33  ;;  %v741_v16 = vpop.f32.mrf.mxu0 }
 0x21e   : > { %v965_v36 = vsel %vm964_vm3, %v962_v34, -inf  ;;  %v752_v49 = vmax.f32 %v740_v48, 0.0 }
 0x21f   : > { %966 = vmax.xlane.f32.xlu0 %v965_v36  ;;  %v744_v17 = vpop.f32.mrf.mxu0 }
 0x220   : > { %v745_v50 = vadd.f32 %v744_v17, %v506_v46 }
 0x221   : > { %v746_v19 = vpop.f32.mrf.mxu0 }
 0x222   : > { %v757_v20 = vmax.f32 %v745_v50, 0.0 }
 0x223   : > { %969 = vmax.xlane.f32.xlu0 %v968_v40 }
 0x2a8   : > { %v967_v1 = vpop.xlane.xlu0 %966 }
 0x2a9   : > { %v971_v2 = vsub.f32 %v962_v34, %v967_v1 }
 0x2ab   : > { %v973_v3 = vmul.f32 1.442695, %v971_v2 }
 0x2ac   : > { %v970_v4 = vpop.xlane.xlu0 %969 }
 0x2ad   : > { %1597 = vpow2.f32 %v973_v3  ;;  %v972_v5 = vsub.f32 %v963_v37, %v970_v4 }
 0x2af   : > { %v975_v6 = vmul.f32 1.442695, %v972_v5 }
 0x2b1   : > { %1599 = vpow2.f32 %v975_v6 }
 0x2ba   : > { %v1598_v7 = vpop.eup %1597 }
 0x2bb   : > { %v977_v8 = vsel %vm964_vm3, %v1598_v7, 0.0 }
 0x2bc   : > { %978 = vadd.xlane.f32.xlu1 %v977_v8 }
 0x2be   : > { %v1600_v35 = vpop.eup %1599 }
 0x2bf   : > { %v980_v9 = vsel %vm964_vm3, %v1600_v35, 0.0 }
 0x2c0   : > { %981 = vadd.xlane.f32.xlu1 %v980_v9 }
 0x2d1   : > { %1191 = vrot.lane.b32.xlu1 %v2045_v30, %s1753_s19 }
 0x2d5   : > { %1195 = vrot.lane.b32.xlu1 %v2061_v42, %s1753_s19 }
 0x2d9   : > { %1197 = vrot.lane.b32.xlu1 %v755_v62, %s1753_s19 }
 0x2dd   : > { %1218 = vrot.lane.b32.xlu1 %v751_v12, %s1753_s19 }
 0x2e1   : > { %1222 = vrot.lane.b32.xlu1 %v756_v14, %s1753_s19 }
 0x345   : > { %v979_v21 = vpop.xlane.xlu1 %978 }
 0x346   : > { %1601 = vrcp.f32 %v979_v21 }
 0x349   : > { %v982_v22 = vpop.xlane.xlu1 %981 }
 0x34a   : > { %1603 = vrcp.f32 %v982_v22 }
 0x34d   : > { %v2198_v45 = vpop.permute.xlu1 %1191 }
 0x353   : > { %v1602_v55 = vpop.eup %1601 }
 0x354   : > { %v985_v59 = vmul.f32 %v1602_v55, %v1598_v7 }
 0x356   : > { %v987_v62 = vsel %vm964_vm3, %v985_v59, 0.0 }
 0x357   : > { %v1604_v11 = vpop.eup %1603  ;;  %989 = vst [vmem:[%s2174_s22] sm:$0xff] %v987_v62 }
 0x358   : > { %v986_v23 = vmul.f32 %v1604_v11, %v1600_v35 }
 0x35a   : > { %v988_v24 = vsel %vm964_vm3, %v986_v23, 0.0 }
 0x35b   : > { %v991_v26 = vadd.f32 %v988_v24, %v987_v62  ;;  %990 = vst [vmem:[%s2174_s22 + $0x8] sm:$0xff] %v988_v24  ;;  %s1654_s22 = scalar_lea.vmem %s1653_s26, 512 }
 0x35c   : > { %p1656_p0 = scmp.lt.s32.totalorder %s1654_s22, %s1648_s24 }
 0x35d   : > { %v992_v27 = vrot.slane %v991_v26, 4 }
 0x35e   : > { %p1657_p1 = por %p1656_p0, %p1655_p11 }
 0x35f   : > { %v993_v28 = vadd.f32 %v992_v27, %v991_v26 }
 0x360   : > { %p1658_p3 = pnand %p1657_p1, %p1651_p8 }
 0x361   : > { %v994_v29 = vrot.slane %v993_v28, 2 }
 0x363   : > { %v995_v33 = vadd.f32 %v994_v29, %v993_v28 }
 0x365   : > { %v996_v34 = vrot.slane %v995_v33, 1 }
 0x367   : > { %v997_v36 = vadd.f32 %v996_v34, %v995_v33 }
 0x369   : > { %v999_v37 = vmul.f32 0.0625, %v997_v36 }
 0x36b   : > { %v1000_v40 = vmul.f32 %v999_v37, %v999_v37 }
 0x36d   : > { %v1001_v43 = vsel %vm964_vm3, %v1000_v40, 0.0 }
 0x36e   : > { %1002 = vadd.xlane.f32.xlu0 %v1001_v43 }
 0x384   : > { %1193 = vrot.lane.b32.xlu0 %v750_v47, %s1753_s19  ;;  %v1196_v47 = vpop.permute.xlu1 %1195 }
 0x388   : > { %1220 = vrot.lane.b32.xlu0 %v752_v49, %s1753_s19  ;;  %v2200_v54 = vpop.permute.xlu1 %1197 }
 0x38c   : > { %1224 = vrot.lane.b32.xlu0 %v757_v20, %s1753_s19  ;;  %v2205_v58 = vpop.permute.xlu1 %1218 }
 0x390   : > { %v2212_v63 = vpop.permute.xlu1 %1222 }
 0x3f7   : > { %v1003_v56 = vpop.xlane.xlu0 %1002 }
 0x3f8   : > { %1605 = vrsqrt.f32 %v1003_v56 }
 0x3fb   : > { %v2203_v57 = vpop.permute.xlu0 %1193 }
 0x3ff   : > { %v1221_v60 = vpop.permute.xlu0 %1220 }
 0x400   : > { %v1226_v61 = vsel %vm1199_vm5, %v2205_v58, %v1221_v60 }
 0x401   : > { %1236 = vst [vmem:[%s2209_s12 + $0x10] sm:$0xff] %v1226_v61 }
 0x403   : > { %v1225_v1 = vpop.permute.xlu0 %1224 }
 0x404   : > { %v1227_v2 = vsel %vm1199_vm5, %v2212_v63, %v1225_v1 }
 0x405   : > { %v1606_v3 = vpop.eup %1605  ;;  %1239 = vst [vmem:[%s2209_s12 + $0x28] sm:$0xff] %v1227_v2 }
 0x406   : > { %v1005_v4 = vmul.f32 1.4142135, %v1606_v3 }
 0x408   : > { %v1006_v5 = vmul.f32 %v1005_v4, %v985_v59  ;;  %v1007_v6 = vmul.f32 %v1005_v4, %v986_v23 }
 0x40a   : > { %1413 = vmatmul.mubr.msk.f32.vlgmr.msra.gmra.mxu0 %vm964_vm3, %v1006_v5  ;;  %1418 = vmatmul.mubr.msk.f32.vlgmr.msra.gmra.mxu1 %vm964_vm3, %v1007_v6 }
 0x40b   : > { %1416 = vmatpush1.msk.msra.mxu0 %vm1017_vm4, %v1099_v52  ;;  %1092 = vmatprep.mubr.f32.mxu0 %v1752_v0 }
 0x40e   : > { %1414 = vmatmul.mubr.msk.f32.gmra.mxu0 %vm964_vm3, %v1007_v6 }
 0x40f   : > { %1170 = vmatprep.mubr.f32.mxu0 %v1752_v0 }
 0x412   : > { %1417 = vmatmul.mubr.msk.f32.vlgmr.msra.gmra.mxu0 %vm964_vm3, %v1006_v5 }
 0x413   : > { %1661 = shalt.err (!%p1658_p3)
}
 0x414   : > { %s1662_s10 = scalar_lea.hbm %s2229_s21, 256  ;;  %s1666_s19 = scalar_lea.hbm %s2334_s8, 512 }
 0x415   : > { %p1663_p2 = scmp.ne.s32.totalorder %s2229_s21, %s1662_s10  ;;  %p1667_p13 = scmp.lt.s32.totalorder %s2229_s21, %s2334_s8 }
 0x416   : > { %p1668_p6 = scmp.lt.s32.totalorder %s1666_s19, %s1662_s10 }
 0x417   : > { %p1664_p4 = pnand %p1663_p2, %p1843_p5 }
 0x418   : > { %p1669_p9 = por %p1668_p6, %p1667_p13 }
 0x419   : > { %p1665_p7 = pneg %p1664_p4 }
 0x41b   : > { %p1670_p10 = pnand %p1669_p9, %p1665_p7 }
 0x41d   : > { %1673 = shalt.err (!%p1670_p10)
}
 0x41e   : > { %s1755_s24 = smov 128   ;;  %s1756_s26 = smov 8   ;;  %v1201_v35 = vsel %vm1199_vm5, %v1196_v47, %v2200_v54  ;;  %v1200_v17 = vsel %vm1199_vm5, %v2198_v45, %v2203_v57 }
 0x41f   : > { %s2344_s22 = scalar_lea.sflag [#allocation9], %s2170_s20  ;;  %s1241_s13 = scalar_lea.sflag [#allocation4], %s2170_s20 }
 0x420   : > { %1531 = dma.vmem_to_hbm [thread:$0]  (%p1843_p5), %s2231_s18, 256, %s2229_s21, %s2344_s22, %s1755_s24, %s1755_s24, %s1756_s26  }
 0x421   : > { %s1521_s18 = smul.u32 768, %s1826_s9  ;;  %s1259_s21 = sshll.u32 %s2209_s12, 4  ;;  %s2275_s21 = int_to_ptr.vmem [resolvable:$true] %s1259_s21 }
 0x422   : > { %s1674_s17 = scalar_lea.vmem %s2275_s21, 768  ;;  %s1757_s19 = smov [#allocation7]  }
 0x423   : > { %s2281_s10 = scalar_lea.hbm %s2333_s7, %s1521_s18  ;;  %p1675_p12 = scmp.ne.s32.totalorder %s2275_s21, %s1674_s17 }
 0x424   : > { %s1678_s25 = sshll.u32 %s1757_s19, 4  ;;  %s1679_s25 = int_to_ptr.vmem [resolvable:$false] %s1678_s25 }
 0x425   : > { %p1676_p8 = pnand %p1675_p12, %p1843_p5  ;;  %s1680_s24 = scalar_lea.vmem %s1679_s25, 1536 }
 0x426   : > { %p1681_p0 = scmp.lt.s32.totalorder %s2275_s21, %s1679_s25  ;;  %p1682_p1 = scmp.lt.s32.totalorder %s1680_s24, %s1674_s17 }
 0x427   : > { %p1677_p11 = pneg %p1676_p8 }
 0x428   : > { %p1683_p3 = por %p1682_p1, %p1681_p0 }
 0x42a   : > { %p1684_p2 = pnand %p1683_p3, %p1677_p11 }
 0x4ca   : > { %v1088_v0 = vpop.f32.mrf.mxu0  ;;  %v1178_v7 = vpop.f32.mrf.mxu1 }
 0x4cb   : > { %v1208_v41 = vmul.f32 %v1201_v35, %v1178_v7  ;;  %v1183_v19 = vmul.f32 %v1088_v0, %v748_v32 }
 0x4cc   : > { %v1090_v8 = vpop.f32.mrf.mxu0  ;;  %v1180_v9 = vpop.f32.mrf.mxu1 }
 0x4cd   : > { %v1209_v13 = vmul.f32 %v2200_v54, %v1180_v9 }
 0x4ce   : > { %v1094_v38 = vpop.f32.mrf.mxu0 }
 0x4cf   : > { %v1185_v10 = vmul.f32 %v1094_v38, %v753_v39 }
 0x4d0   : > { %v1096_v12 = vpop.f32.mrf.mxu0 }
 0x4d1   : > { %v1212_v14 = vadd.f32 %v1208_v41, %v1185_v10  ;;  %v1186_v15 = vmul.f32 %v1096_v12, %v2061_v42  ;;  %v1184_v42 = vmul.f32 %v1090_v8, %v2045_v30 }
 0x4d2   : > { %v1172_v16 = vpop.f32.mrf.mxu0 }
 0x4d3   : > { %1237 = vst [vmem:[%s2209_s12 + $0x18] sm:$0xff] %v1212_v14  ;;  %v1213_v31 = vadd.f32 %v1209_v13, %v1186_v15  ;;  %v1206_v39 = vmul.f32 %v1200_v17, %v1172_v16 }
 0x4d4   : > { %v1174_v21 = vpop.f32.mrf.mxu0 }
 0x4d5   : > { %v1233_v22 = vsel %vm1199_vm5, %v1213_v31, %v2212_v63  ;;  %v1210_v55 = vadd.f32 %v1206_v39, %v1183_v19  ;;  %v1207_v59 = vmul.f32 %v2203_v57, %v1174_v21 }
 0x4d6   : > { %1238 = vst [vmem:[%s2209_s12 + $0x20] sm:$0xff] %v1233_v22 }
 0x4d7   : > { %1234 = vst [vmem:[%s2209_s12] sm:$0xff] %v1210_v55  ;;  %v1211_v25 = vadd.f32 %v1207_v59, %v1184_v42 }
 0x4d9   : > { %v1232_v30 = vsel %vm1199_vm5, %v1211_v25, %v2205_v58 }
 0x4da   : > { %1235 = vst [vmem:[%s2209_s12 + $0x8] sm:$0xff] %v1232_v30 }
 0x4db   : > { %1687 = shalt.err (!%p1684_p2)
}
 0x4dc   : > { %s1688_s12 = scalar_lea.hbm %s2281_s10, 768  ;;  %s1692_s18 = scalar_lea.hbm %s2333_s7, 1536 }
 0x4dd   : > { %p1689_p4 = scmp.ne.s32.totalorder %s2281_s10, %s1688_s12  ;;  %p1693_p6 = scmp.lt.s32.totalorder %s2281_s10, %s2333_s7 }
 0x4de   : > { %p1694_p9 = scmp.lt.s32.totalorder %s1692_s18, %s1688_s12 }
 0x4df   : > { %p1690_p7 = pnand %p1689_p4, %p1843_p5 }
 0x4e0   : > { %p1695_p10 = por %p1694_p9, %p1693_p6 }
 0x4e1   : > { %p1691_p13 = pneg %p1690_p7 }
 0x4e3   : > { %p1696_p12 = pnand %p1695_p10, %p1691_p13 }
 0x4e5   : > { %1699 = shalt.err (!%p1696_p12)
}
 0x4e6   : > { %s1758_s17 = smov 384   ;;  %s1759_s19 = smov 24  }
 0x4e7   : > { %1530 = dma.vmem_to_hbm [thread:$0]  (%p1843_p5), %s2275_s21, 768, %s2281_s10, %s1241_s13, %s1758_s17, %s1758_s17, %s1759_s19  }
 0x4e8 PF: > { %p1552_p8 = scmp.ge.s32.totalorder %s1746_s30, 2  ;;  %s1290_s25 = sand.u32 1, %s1734_s27  }
 0x4e9   : > { %p2345_p11 = scmp.ne.s32.totalorder %s2337_s16, 0  ;;  %s1291_s24 = scalar_lea.sflag [#allocation4], %s1290_s25 }
 0x4eb   : > { %p1542_p0 = pnand %p1552_p8, %p2345_p11 }
 0x4ed   : > { %p1543_p1 = pneg %p1542_p0 }
 0x4ef   : > { %1725 = dma.done.wait (%p1543_p1), %s1291_s24, 768  }
 0x4f0   : > { %1727 = vsyncadd (%p1543_p1), %s1291_s24, 4294966528  ;;  %s1300_s12 = scalar_lea.sflag [#allocation9], %s1290_s25 }
 0x4f1   : > { %1729 = dma.done.wait (%p1543_p1), %s1300_s12, 256  }
 0x4f2   : > { %1731 = vsyncadd (%p1543_p1), %s1300_s12, 4294967040  ;;  %p24_p5 = scmp.ge.s32.totalorder %s1830_s11, 4   ;;  %s2346_s27 = smov %s1738_s28 }
 0x4f3   : > { %s2347_s28 = smov %s1742_s29  ;;  %s2348_s29 = smov %s1841_s14 }
 0x4f4   : > { %s2349_s30 = smov %s1830_s11  ;;  %26 = sbr.rel (!%p24_p5) target bundleno = 7 (0x7), region = 110 }
 0x4f9   :  { %1305 = vsyncpa [#allocation3], 1 }
 0x4fa   :  { %1307 = vsyncpa [#allocation3 + $0x1], 1 }
 0x4fb   :  { %1308 = vsyncpa [#allocation4], 1 }
 0x4fc   :  { %1310 = vsyncpa [#allocation4 + $0x1], 1 }
 0x4fd   :  { %1311 = vsyncpa [#allocation9], 1 }
 0x4fe   :  { %1313 = vsyncpa [#allocation9 + $0x1], 1 }
 0x4ff   :  { %1314 = vsyncpa [#allocation5], 1 }
 0x500   :  { %1316 = vsyncpa [#allocation5 + $0x1], 1 }

</bundles_post_ra>
